<compile_context>
chip_gen: v7x
topology: tpu7x:2x2x1
jax: 0.10.0
libtpu: 0.0.40
codegen_flags: <defaults>
</compile_context>

<pallas_src>
import functools

import jax
import jax.numpy as jnp
from jax.experimental import pallas as pl
from jax.experimental.pallas import tpu as pltpu

NUM_LABELS_PAD = 128                 # lane-dense classifier output width
VMEM_LIMIT_BYTES = 48 * 1024 * 1024  # explicit scoped-VMEM limit (< v7x 64 MiB)


def _pick_tile(n, candidates=(512, 256, 128, 64, 32, 16, 8)):
    """Largest 8-aligned tile dividing n that still yields >= 2 grid steps."""
    for t in candidates:
        if n % t == 0 and n // t >= 2:
            return t
    return n


# ----------------------------- in-kernel helpers ----------------------------

def _layernorm(h, g, b, eps=1e-12):
    mean = jnp.mean(h, axis=-1, keepdims=True)
    var = jnp.mean((h - mean) ** 2, axis=-1, keepdims=True)
    return (h - mean) * jax.lax.rsqrt(var + eps) * g + b


def _gelu(y):
    # tanh-approximation GELU (HF BERT uses erf-GELU; numerically ~identical).
    c = jnp.float32(0.7978845608028654)  # sqrt(2/pi)
    return 0.5 * y * (1.0 + jnp.tanh(c * (y + 0.044715 * y * y * y)))


def _bf16_dot(a, w_ref, b_ref):
    """bf16 MXU matmul with f32 accumulation + f32 bias add."""
    return (jnp.dot(a.astype(jnp.bfloat16), w_ref[...],
                    preferred_element_type=jnp.float32) + b_ref[...])


# ------------------------------ Pallas kernels ------------------------------

def _layernorm_kernel(x_ref, g_ref, b_ref, o_ref):
    o_ref[...] = _layernorm(x_ref[...], g_ref[...], b_ref[...])


def _encoder_layer_body(hid_q_ref, hid_f_ref, mask_ref,
                        qw, qb, kvw, kvb, ow, ob, g1, b1,
                        iw, ib, fw, fb, g2, b2,
                        cls_w, cls_b, out_ref, ctx_ref,
                        *, num_heads, head_dim):
    """One grid step: one query-tile of one batch element, full encoder layer."""
    x_q = hid_q_ref[0]      # (Tq, H) f32  query-tile rows (residual stream)
    x_f = hid_f_ref[0]      # (S,  H) f32  full sequence (keys / values)
    mask = mask_ref[0]      # (1,  S) f32  additive attention mask
    hdim = x_q.shape[-1]

    # Fused projections: full-contraction, wide-N MXU matmuls.
    # The softmax 1/sqrt(Dh) scale is pre-folded into q_w / q_b at init time.
    q_all = _bf16_dot(x_q, qw, qb)             # (Tq, H)  f32
    kv_all = _bf16_dot(x_f, kvw, kvb)          # (S, 2H)  f32

    # bf16 casts hoisted out of the per-head loop (cast each slab once).
    q_bf = q_all.astype(jnp.bfloat16)
    k_bf = kv_all[:, :hdim].astype(jnp.bfloat16)
    v_bf = kv_all[:, hdim:].astype(jnp.bfloat16)

    # Per-head attention.  Each head's context is written straight into the
    # (Tq, H) VMEM scratch slice -- no jnp.concatenate materialization.
    # TODO(synk): head-batched dot_general / lane-aligned (Dh->128) head blocks
    # would remove the remaining per-head lane extracts; for S >~ 1k this
    # block should become a KV-tiled online-softmax (flash-style) loop.
    for h in range(num_heads):                 # static, unrolled (small nH)
        lo, hi = h * head_dim, (h + 1) * head_dim
        s = jax.lax.dot_general(q_bf[:, lo:hi], k_bf[:, lo:hi],
                                (((1,), (1,)), ((), ())),
                                preferred_element_type=jnp.float32)  # (Tq, S)
        s = s + mask
        s = s - jnp.max(s, axis=-1, keepdims=True)
        p = jnp.exp(s)
        p = (p * pl.reciprocal(jnp.sum(p, axis=-1, keepdims=True), approx=True)
             ).astype(jnp.bfloat16)
        ctx_ref[:, lo:hi] = jnp.dot(p, v_bf[:, lo:hi],
                                    preferred_element_type=jnp.float32)

    # Output projection (single full-K matmul) + Add & LayerNorm.
    attn_out = _bf16_dot(ctx_ref[...], ow, ob)
    h1 = _layernorm(attn_out + x_q, g1[...], b1[...])

    # FFN: cast GELU output to bf16 immediately (halves the live (Tq,I) slab).
    ffn = _gelu(_bf16_dot(h1, iw, ib)).astype(jnp.bfloat16)
    ffn_out = jnp.dot(ffn, fw[...], preferred_element_type=jnp.float32) + fb[...]
    h2 = _layernorm(ffn_out + h1, g2[...], b2[...])

    if cls_w is None:
        out_ref[0] = h2
    else:
        # Last layer: classifier fused into the epilogue; last_hidden_state
        # never round-trips HBM.  Output lane-padded to 128 labels.
        out_ref[0] = _bf16_dot(h2, cls_w, cls_b)


# -------------------------------- wrappers -----------------------------------

def pallas_layernorm(x, gamma, beta):
    M, H = x.shape
    tm = _pick_tile(M)
    return pl.pallas_call(
        _layernorm_kernel,
        out_shape=jax.ShapeDtypeStruct((M, H), jnp.float32),
        grid=(M // tm,),
        in_specs=[
            pl.BlockSpec((tm, H), lambda i: (i, 0)),
            pl.BlockSpec((1, H), lambda i: (0, 0),
                         pipeline_mode=pl.Buffered(buffer_count=1)),
            pl.BlockSpec((1, H), lambda i: (0, 0),
                         pipeline_mode=pl.Buffered(buffer_count=1)),
        ],
        out_specs=pl.BlockSpec((tm, H), lambda i: (i, 0)),
        compiler_params=pltpu.CompilerParams(
            dimension_semantics=("parallel",)),
    )(x, gamma, beta)


def pallas_encoder_layer(hidden, mask_add, lw, *, num_heads, head_dim,
                         classifier=None):
    """One fused pallas_call per encoder layer, grid = (batch, query-tiles)."""
    B, S, H = hidden.shape
    tq = _pick_tile(S, (256, 128, 64, 32, 16, 8))
    n_q = S // tq
    q_tiled = n_q > 1
    fuse_cls = classifier is not None

    def const_spec(shape):
        # Constant index_map across the whole grid: a single VMEM buffer is
        # enough -> Buffered(1) halves the weight VMEM footprint.
        return pl.BlockSpec(shape, lambda b, s: (0,) * len(shape),
                            pipeline_mode=pl.Buffered(buffer_count=1))

    in_specs = [pl.BlockSpec((1, tq, H), lambda b, s: (b, s, 0))]  # query rows
    operands = [hidden]
    if q_tiled:
        # Full-sequence view of the same activations for the K/V projection.
        in_specs.append(pl.BlockSpec((1, S, H), lambda b, s: (b, 0, 0)))
        operands.append(hidden)
    in_specs.append(pl.BlockSpec((1, 1, S), lambda b, s: (b, 0, 0)))  # mask
    operands.append(mask_add)

    w_names = ("q_w", "q_b", "kv_w", "kv_b", "o_w", "o_b", "ln1_g", "ln1_b",
               "i_w", "i_b", "f_w", "f_b", "ln2_g", "ln2_b")
    for name in w_names:
        in_specs.append(const_spec(lw[name].shape))
        operands.append(lw[name])
    if fuse_cls:
        cls_w, cls_b = classifier
        in_specs += [const_spec(cls_w.shape), const_spec(cls_b.shape)]
        operands += [cls_w, cls_b]

    out_w = NUM_LABELS_PAD if fuse_cls else H
    n_w = len(w_names)

    def kernel(*refs):
        i = 0
        hid_q = refs[i]; i += 1
        if q_tiled:
            hid_f = refs[i]; i += 1
        else:
            hid_f = hid_q
        mask = refs[i]; i += 1
        ws = refs[i:i + n_w]; i += n_w
        if fuse_cls:
            cw, cb = refs[i], refs[i + 1]; i += 2
        else:
            cw = cb = None
        out_ref, ctx_ref = refs[i], refs[i + 1]
        _encoder_layer_body(hid_q, hid_f, mask, *ws, cw, cb, out_ref, ctx_ref,
                            num_heads=num_heads, head_dim=head_dim)

    return pl.pallas_call(
        kernel,
        out_shape=jax.ShapeDtypeStruct((B, S, out_w), jnp.float32),
        grid=(B, n_q),
        in_specs=in_specs,
        out_specs=pl.BlockSpec((1, tq, out_w), lambda b, s: (b, s, 0)),
        scratch_shapes=[pltpu.VMEM((tq, H), jnp.float32)],   # per-head ctx slab
        compiler_params=pltpu.CompilerParams(
            dimension_semantics=("parallel", "parallel"),     # 2 TCs on v7x
            vmem_limit_bytes=VMEM_LIMIT_BYTES),
    )(*operands)


# --------------------------------- model --------------------------------------

def init_params(key, cfg):
    H, I = cfg["hidden"], cfg["intermediate"]
    V, P = cfg["vocab"], cfg["max_pos"]
    T, L, NL = cfg["type_vocab"], cfg["layers"], cfg["num_labels"]
    Dh = cfg["head_dim"]
    keys = iter(jax.random.split(key, 8 + 8 * L))

    def w(shape, scale=0.02):
        return scale * jax.random.normal(next(keys), shape, jnp.float32)

    zeros = lambda s: jnp.zeros(s, jnp.float32)
    ones = lambda s: jnp.ones(s, jnp.float32)

    # Lane-dense classifier weights: zero-pad num_labels -> NUM_LABELS_PAD.
    cls_w = jnp.zeros((H, NUM_LABELS_PAD), jnp.float32)
    cls_w = cls_w.at[:, :NL].set(w((H, NL))).astype(jnp.bfloat16)

    params = {
        "word_emb": w((V, H)),
        "pos_emb": w((P, H)),
        "type_emb": w((T, H)),
        "emb_ln_g": ones((1, H)), "emb_ln_b": zeros((1, H)),
        "layers": [],
        "cls_w": cls_w,                        # bf16 (H, 128)
        "cls_b": zeros((1, NUM_LABELS_PAD)),   # f32  (1, 128)
    }
    attn_scale = Dh ** -0.5
    for _ in range(L):
        params["layers"].append({
            # Softmax 1/sqrt(Dh) folded into the Q projection (weight & bias;
            # bias is zero in this synthetic init).  MXU weights bf16,
            # biases / LN params f32.
            "q_w": (w((H, H)) * attn_scale).astype(jnp.bfloat16),
            "q_b": zeros((1, H)),
            "kv_w": w((H, 2 * H)).astype(jnp.bfloat16),
            "kv_b": zeros((1, 2 * H)),
            "o_w": w((H, H)).astype(jnp.bfloat16), "o_b": zeros((1, H)),
            "ln1_g": ones((1, H)), "ln1_b": zeros((1, H)),
            "i_w": w((H, I)).astype(jnp.bfloat16), "i_b": zeros((1, I)),
            "f_w": w((I, H)).astype(jnp.bfloat16), "f_b": zeros((1, H)),
            "ln2_g": ones((1, H)), "ln2_b": zeros((1, H)),
        })
    return params


@functools.partial(jax.jit, static_argnames=("cfg",))
def ner_forward(params, input_ids, attention_mask, cfg):
    cfg = dict(cfg)
    B, S = input_ids.shape
    H, nH, Dh, NL = cfg["hidden"], cfg["heads"], cfg["head_dim"], cfg["num_labels"]

    # --- BERT embeddings (gathers are XLA glue; LN is a row-tiled kernel) ---
    word = params["word_emb"][input_ids]                        # (B,S,H)
    pos = params["pos_emb"][jnp.arange(S)][None, :, :]          # (1,S,H)
    typ = params["type_emb"][0][None, None, :]                  # token_type_ids=0
    emb = (word + pos + typ).reshape(B * S, H)
    hidden = pallas_layernorm(emb, params["emb_ln_g"], params["emb_ln_b"])
    hidden = hidden.reshape(B, S, H)
    # hidden_dropout_prob / attention_probs_dropout_prob: identity in eval mode.

    # HF-style additive extended attention mask, (B, 1, S).
    mask_add = ((1.0 - attention_mask.astype(jnp.float32)) * -10000.0
                ).reshape(B, 1, S)

    # --- encoder: one fused Pallas kernel per layer; the classifier head is
    #     fused into the last layer's epilogue (lane-padded to 128 labels). ---
    n_layers = len(params["layers"])
    out = hidden
    for li, lw in enumerate(params["layers"]):
        last = li == n_layers - 1
        out = pallas_encoder_layer(
            out, mask_add, lw, num_heads=nH, head_dim=Dh,
            classifier=(params["cls_w"], params["cls_b"]) if last else None)

    # out is (B, S, NUM_LABELS_PAD); slice back to the true label count.
    return out[:, :, :NL]


# ---------------------------------- main ---------------------------------------

if __name__ == "__main__":
    cfg = (("vocab", 100), ("hidden", 32), ("heads", 2), ("head_dim", 16),
           ("intermediate", 64), ("max_pos", 32), ("type_vocab", 2),
           ("layers", 2), ("num_labels", 5))
    cfg_d = dict(cfg)

    key = jax.random.PRNGKey(0)
    k_ids, k_params = jax.random.split(key)

    B, S = 2, 16
    input_ids = jax.random.randint(k_ids, (B, S), 0, cfg_d["vocab"],
                                   dtype=jnp.int32)
    attention_mask = jnp.concatenate(
        [jnp.ones((B, 12), jnp.int32), jnp.zeros((B, 4), jnp.int32)], axis=1)

    params = init_params(k_params, cfg_d)
    logits = ner_forward(params, input_ids, attention_mask, cfg)
    jax.block_until_ready(logits)

    assert logits.shape == (B, S, cfg_d["num_labels"])
    assert bool(jnp.all(jnp.isfinite(logits)))
    print("KERNEL_OK")
</pallas_src>

<mosaic_0001>
module attributes {stable_mosaic.version = 11 : i64} {
  func.func @_layernorm_kernel(%arg0: i32, %arg1: memref<16x32xf32, #tpu.memory_space<vmem>>, %arg2: memref<1x32xf32, #tpu.memory_space<vmem>>, %arg3: memref<1x32xf32, #tpu.memory_space<vmem>>, %arg4: memref<16x32xf32, #tpu.memory_space<vmem>>) attributes {dimension_semantics = [#tpu.dimension_semantics<parallel>], iteration_bounds = array<i64: 2>, scalar_prefetch = 0 : i64, scratch_operands = 0 : i64, tpu.core_type = #tpu.core_type<tc>, window_params = [{transform_indices = @transform_0, window_bounds = array<i64: 16, 32>}, {pipeline_mode = #tpu.pipeline_mode<synchronous>, transform_indices = @transform_1, window_bounds = array<i64: 1, 32>}, {pipeline_mode = #tpu.pipeline_mode<synchronous>, transform_indices = @transform_2, window_bounds = array<i64: 1, 32>}, {transform_indices = @transform_3, window_bounds = array<i64: 16, 32>}]} {
    %c0 = arith.constant 0 : index
    %c0_0 = arith.constant 0 : index
    %0 = vector.load %arg1[%c0, %c0_0] : memref<16x32xf32, #tpu.memory_space<vmem>>, vector<16x32xf32>
    %c0_1 = arith.constant 0 : index
    %c0_2 = arith.constant 0 : index
    %1 = vector.load %arg2[%c0_1, %c0_2] : memref<1x32xf32, #tpu.memory_space<vmem>>, vector<1x32xf32>
    %c0_3 = arith.constant 0 : index
    %c0_4 = arith.constant 0 : index
    %2 = vector.load %arg3[%c0_3, %c0_4] : memref<1x32xf32, #tpu.memory_space<vmem>>, vector<1x32xf32>
    %cst = arith.constant dense<0.000000e+00> : vector<16xf32>
    %3 = vector.multi_reduction <add>, %0, %cst [1] : vector<16x32xf32> to vector<16xf32>
    %4 = vector.shape_cast %3 : vector<16xf32> to vector<16x1xf32>
    %cst_5 = arith.constant 3.200000e+01 : f32
    %5 = vector.broadcast %cst_5 : f32 to vector<16x1xf32>
    %6 = arith.divf %4, %5 : vector<16x1xf32>
    %7 = vector.broadcast %6 : vector<16x1xf32> to vector<16x32xf32>
    %8 = arith.subf %0, %7 : vector<16x32xf32>
    %9 = arith.mulf %8, %8 : vector<16x32xf32>
    %cst_6 = arith.constant dense<0.000000e+00> : vector<16xf32>
    %10 = vector.multi_reduction <add>, %9, %cst_6 [1] : vector<16x32xf32> to vector<16xf32>
    %11 = vector.shape_cast %10 : vector<16xf32> to vector<16x1xf32>
    %cst_7 = arith.constant 3.200000e+01 : f32
    %12 = vector.broadcast %cst_7 : f32 to vector<16x1xf32>
    %13 = arith.divf %11, %12 : vector<16x1xf32>
    %14 = vector.broadcast %6 : vector<16x1xf32> to vector<16x32xf32>
    %15 = arith.subf %0, %14 : vector<16x32xf32>
    %cst_8 = arith.constant 9.99999996E-13 : f32
    %16 = vector.broadcast %cst_8 : f32 to vector<16x1xf32>
    %17 = arith.addf %13, %16 : vector<16x1xf32>
    %18 = math.rsqrt %17 : vector<16x1xf32>
    %19 = vector.broadcast %18 : vector<16x1xf32> to vector<16x32xf32>
    %20 = arith.mulf %15, %19 : vector<16x32xf32>
    %21 = vector.broadcast %1 : vector<1x32xf32> to vector<16x32xf32>
    %22 = arith.mulf %20, %21 : vector<16x32xf32>
    %23 = vector.broadcast %2 : vector<1x32xf32> to vector<16x32xf32>
    %24 = arith.addf %22, %23 : vector<16x32xf32>
    %c0_9 = arith.constant 0 : index
    %c0_10 = arith.constant 0 : index
    %25 = vector.load %arg4[%c0_9, %c0_10] : memref<16x32xf32, #tpu.memory_space<vmem>>, vector<16x32xf32>
    tpu.vector_store %arg4[%c0_9, %c0_10], %24 {strides = array<i32>} : memref<16x32xf32, #tpu.memory_space<vmem>>, vector<16x32xf32>,
    return
  }
  func.func @transform_0(%arg0: i32) -> (i32, i32) {
    %c0_i32 = arith.constant 0 : i32
    %c0_i32_0 = arith.constant 0 : i32
    return %arg0, %c0_i32 : i32, i32
  }
  func.func @transform_1(%arg0: i32) -> (i32, i32) {
    %c0_i32 = arith.constant 0 : i32
    %c0_i32_0 = arith.constant 0 : i32
    %c0_i32_1 = arith.constant 0 : i32
    return %c0_i32, %c0_i32_0 : i32, i32
  }
  func.func @transform_2(%arg0: i32) -> (i32, i32) {
    %c0_i32 = arith.constant 0 : i32
    %c0_i32_0 = arith.constant 0 : i32
    %c0_i32_1 = arith.constant 0 : i32
    return %c0_i32, %c0_i32_0 : i32, i32
  }
  func.func @transform_3(%arg0: i32) -> (i32, i32) {
    %c0_i32 = arith.constant 0 : i32
    %c0_i32_0 = arith.constant 0 : i32
    return %arg0, %c0_i32 : i32, i32
  }
}

module attributes {stable_mosaic.version = 11 : i64} {
  func.func @kernel(%arg0: i32, %arg1: i32, %arg2: memref<1x8x32xf32, #tpu.memory_space<vmem>>, %arg3: memref<1x16x32xf32, #tpu.memory_space<vmem>>, %arg4: memref<1x1x16xf32, #tpu.memory_space<vmem>>, %arg5: memref<32x32xbf16, #tpu.memory_space<vmem>>, %arg6: memref<1x32xf32, #tpu.memory_space<vmem>>, %arg7: memref<32x64xbf16, #tpu.memory_space<vmem>>, %arg8: memref<1x64xf32, #tpu.memory_space<vmem>>, %arg9: memref<32x32xbf16, #tpu.memory_space<vmem>>, %arg10: memref<1x32xf32, #tpu.memory_space<vmem>>, %arg11: memref<1x32xf32, #tpu.memory_space<vmem>>, %arg12: memref<1x32xf32, #tpu.memory_space<vmem>>, %arg13: memref<32x64xbf16, #tpu.memory_space<vmem>>, %arg14: memref<1x64xf32, #tpu.memory_space<vmem>>, %arg15: memref<64x32xbf16, #tpu.memory_space<vmem>>, %arg16: memref<1x32xf32, #tpu.memory_space<vmem>>, %arg17: memref<1x32xf32, #tpu.memory_space<vmem>>, %arg18: memref<1x32xf32, #tpu.memory_space<vmem>>, %arg19: memref<1x8x32xf32, #tpu.memory_space<vmem>>, %arg20: memref<8x32xf32, #tpu.memory_space<vmem>>) attributes {dimension_semantics = [#tpu.dimension_semantics<parallel>, #tpu.dimension_semantics<parallel>], iteration_bounds = array<i64: 2, 2>, scalar_prefetch = 0 : i64, scratch_operands = 1 : i64, tpu.core_type = #tpu.core_type<tc>, window_params = [{transform_indices = @transform_0, window_bounds = array<i64: 1, 8, 32>}, {transform_indices = @transform_1, window_bounds = array<i64: 1, 16, 32>}, {transform_indices = @transform_2, window_bounds = array<i64: 1, 1, 16>}, {pipeline_mode = #tpu.pipeline_mode<synchronous>, transform_indices = @transform_3, window_bounds = array<i64: 32, 32>}, {pipeline_mode = #tpu.pipeline_mode<synchronous>, transform_indices = @transform_4, window_bounds = array<i64: 1, 32>}, {pipeline_mode = #tpu.pipeline_mode<synchronous>, transform_indices = @transform_5, window_bounds = array<i64: 32, 64>}, {pipeline_mode = #tpu.pipeline_mode<synchronous>, transform_indices = @transform_6, window_bounds = array<i64: 1, 64>}, {pipeline_mode = #tpu.pipeline_mode<synchronous>, transform_indices = @transform_7, window_bounds = array<i64: 32, 32>}, {pipeline_mode = #tpu.pipeline_mode<synchronous>, transform_indices = @transform_8, window_bounds = array<i64: 1, 32>}, {pipeline_mode = #tpu.pipeline_mode<synchronous>, transform_indices = @transform_9, window_bounds = array<i64: 1, 32>}, {pipeline_mode = #tpu.pipeline_mode<synchronous>, transform_indices = @transform_10, window_bounds = array<i64: 1, 32>}, {pipeline_mode = #tpu.pipeline_mode<synchronous>, transform_indices = @transform_11, window_bounds = array<i64: 32, 64>}, {pipeline_mode = #tpu.pipeline_mode<synchronous>, transform_indices = @transform_12, window_bounds = array<i64: 1, 64>}, {pipeline_mode = #tpu.pipeline_mode<synchronous>, transform_indices = @transform_13, window_bounds = array<i64: 64, 32>}, {pipeline_mode = #tpu.pipeline_mode<synchronous>, transform_indices = @transform_14, window_bounds = array<i64: 1, 32>}, {pipeline_mode = #tpu.pipeline_mode<synchronous>, transform_indices = @transform_15, window_bounds = array<i64: 1, 32>}, {pipeline_mode = #tpu.pipeline_mode<synchronous>, transform_indices = @transform_16, window_bounds = array<i64: 1, 32>}, {transform_indices = @transform_17, window_bounds = array<i64: 1, 8, 32>}]} {
    %c0 = arith.constant 0 : index
    %c0_0 = arith.constant 0 : index
    %c0_1 = arith.constant 0 : index
    %0 = vector.load %arg2[%c0, %c0_0, %c0_1] : memref<1x8x32xf32, #tpu.memory_space<vmem>>, vector<1x8x32xf32>
    %1 = vector.shape_cast %0 : vector<1x8x32xf32> to vector<8x32xf32>
    %c0_2 = arith.constant 0 : index
    %c0_3 = arith.constant 0 : index
    %c0_4 = arith.constant 0 : index
    %2 = vector.load %arg3[%c0_2, %c0_3, %c0_4] : memref<1x16x32xf32, #tpu.memory_space<vmem>>, vector<1x16x32xf32>
    %3 = vector.shape_cast %2 : vector<1x16x32xf32> to vector<16x32xf32>
    %c0_5 = arith.constant 0 : index
    %c0_6 = arith.constant 0 : index
    %c0_7 = arith.constant 0 : index
    %4 = vector.load %arg4[%c0_5, %c0_6, %c0_7] : memref<1x1x16xf32, #tpu.memory_space<vmem>>, vector<1x1x16xf32>
    %5 = vector.shape_cast %4 : vector<1x1x16xf32> to vector<1x16xf32>
    %6 = arith.truncf %1 : vector<8x32xf32> to vector<8x32xbf16>
    %c0_8 = arith.constant 0 : index
    %c0_9 = arith.constant 0 : index
    %7 = vector.load %arg5[%c0_8, %c0_9] : memref<32x32xbf16, #tpu.memory_space<vmem>>, vector<32x32xbf16>
    %cst = arith.constant dense<0.000000e+00> : vector<8x32xf32>
    %8 = tpu.matmul %6, %7, %cst {dimension_numbers = #tpu.dot_dimension_numbers<[1], [0], [0], [1], [0, 0, 1, 1], [], []>} : vector<8x32xbf16>, vector<32x32xbf16>, vector<8x32xf32> -> vector<8x32xf32>
    %c0_10 = arith.constant 0 : index
    %c0_11 = arith.constant 0 : index
    %9 = vector.load %arg6[%c0_10, %c0_11] : memref<1x32xf32, #tpu.memory_space<vmem>>, vector<1x32xf32>
    %10 = vector.broadcast %9 : vector<1x32xf32> to vector<8x32xf32>
    %11 = arith.addf %8, %10 : vector<8x32xf32>
    %12 = arith.truncf %3 : vector<16x32xf32> to vector<16x32xbf16>
    %c0_12 = arith.constant 0 : index
    %c0_13 = arith.constant 0 : index
    %13 = vector.load %arg7[%c0_12, %c0_13] : memref<32x64xbf16, #tpu.memory_space<vmem>>, vector<32x64xbf16>
    %cst_14 = arith.constant dense<0.000000e+00> : vector<16x64xf32>
    %14 = tpu.matmul %12, %13, %cst_14 {dimension_numbers = #tpu.dot_dimension_numbers<[1], [0], [0], [1], [0, 0, 1, 1], [], []>} : vector<16x32xbf16>, vector<32x64xbf16>, vector<16x64xf32> -> vector<16x64xf32>
    %c0_15 = arith.constant 0 : index
    %c0_16 = arith.constant 0 : index
    %15 = vector.load %arg8[%c0_15, %c0_16] : memref<1x64xf32, #tpu.memory_space<vmem>>, vector<1x64xf32>
    %16 = vector.broadcast %15 : vector<1x64xf32> to vector<16x64xf32>
    %17 = arith.addf %14, %16 : vector<16x64xf32>
    %18 = arith.truncf %11 : vector<8x32xf32> to vector<8x32xbf16>
    %19 = vector.extract_strided_slice %17 {offsets = [0, 0], sizes = [16, 32], strides = [1, 1]} : vector<16x64xf32> to vector<16x32xf32>
    %20 = arith.truncf %19 : vector<16x32xf32> to vector<16x32xbf16>
    %21 = vector.extract_strided_slice %17 {offsets = [0, 32], sizes = [16, 32], strides = [1, 1]} : vector<16x64xf32> to vector<16x32xf32>
    %22 = arith.truncf %21 : vector<16x32xf32> to vector<16x32xbf16>
    %23 = vector.extract_strided_slice %18 {offsets = [0, 0], sizes = [8, 16], strides = [1, 1]} : vector<8x32xbf16> to vector<8x16xbf16>
    %24 = vector.extract_strided_slice %20 {offsets = [0, 0], sizes = [16, 16], strides = [1, 1]} : vector<16x32xbf16> to vector<16x16xbf16>
    %cst_17 = arith.constant dense<0.000000e+00> : vector<8x16xf32>
    %25 = tpu.matmul %23, %24, %cst_17 {dimension_numbers = #tpu.dot_dimension_numbers<[1], [1], [0], [0], [0, 0, 1, 0], [], []>} : vector<8x16xbf16>, vector<16x16xbf16>, vector<8x16xf32> -> vector<8x16xf32>
    %26 = vector.broadcast %5 : vector<1x16xf32> to vector<8x16xf32>
    %27 = arith.addf %25, %26 : vector<8x16xf32>
    %cst_18 = arith.constant dense<0xFF800000> : vector<8xf32>
    %28 = vector.multi_reduction <maximumf>, %27, %cst_18 [1] : vector<8x16xf32> to vector<8xf32>
    %29 = vector.shape_cast %28 : vector<8xf32> to vector<8x1xf32>
    %30 = vector.broadcast %29 : vector<8x1xf32> to vector<8x16xf32>
    %31 = arith.subf %27, %30 : vector<8x16xf32>
    %32 = math.exp %31 : vector<8x16xf32>
    %cst_19 = arith.constant dense<0.000000e+00> : vector<8xf32>
    %33 = vector.multi_reduction <add>, %32, %cst_19 [1] : vector<8x16xf32> to vector<8xf32>
    %34 = vector.shape_cast %33 : vector<8xf32> to vector<8x1xf32>
    %35 = tpu.reciprocal %34 {approx = true} : vector<8x1xf32> -> vector<8x1xf32>
    %36 = vector.broadcast %35 : vector<8x1xf32> to vector<8x16xf32>
    %37 = arith.mulf %32, %36 : vector<8x16xf32>
    %38 = arith.truncf %37 : vector<8x16xf32> to vector<8x16xbf16>
    %39 = vector.extract_strided_slice %22 {offsets = [0, 0], sizes = [16, 16], strides = [1, 1]} : vector<16x32xbf16> to vector<16x16xbf16>
    %cst_20 = arith.constant dense<0.000000e+00> : vector<8x16xf32>
    %40 = tpu.matmul %38, %39, %cst_20 {dimension_numbers = #tpu.dot_dimension_numbers<[1], [0], [0], [1], [0, 0, 1, 1], [], []>} : vector<8x16xbf16>, vector<16x16xbf16>, vector<8x16xf32> -> vector<8x16xf32>
    %c0_21 = arith.constant 0 : index
    %c0_22 = arith.constant 0 : index
    %41 = vector.load %arg20[%c0_21, %c0_22] : memref<8x32xf32, #tpu.memory_space<vmem>>, vector<8x16xf32>
    tpu.vector_store %arg20[%c0_21, %c0_22], %40 {strides = array<i32>} : memref<8x32xf32, #tpu.memory_space<vmem>>, vector<8x16xf32>,
    %42 = vector.extract_strided_slice %18 {offsets = [0, 16], sizes = [8, 16], strides = [1, 1]} : vector<8x32xbf16> to vector<8x16xbf16>
    %43 = vector.extract_strided_slice %20 {offsets = [0, 16], sizes = [16, 16], strides = [1, 1]} : vector<16x32xbf16> to vector<16x16xbf16>
    %cst_23 = arith.constant dense<0.000000e+00> : vector<8x16xf32>
    %44 = tpu.matmul %42, %43, %cst_23 {dimension_numbers = #tpu.dot_dimension_numbers<[1], [1], [0], [0], [0, 0, 1, 0], [], []>} : vector<8x16xbf16>, vector<16x16xbf16>, vector<8x16xf32> -> vector<8x16xf32>
    %45 = vector.broadcast %5 : vector<1x16xf32> to vector<8x16xf32>
    %46 = arith.addf %44, %45 : vector<8x16xf32>
    %cst_24 = arith.constant dense<0xFF800000> : vector<8xf32>
    %47 = vector.multi_reduction <maximumf>, %46, %cst_24 [1] : vector<8x16xf32> to vector<8xf32>
    %48 = vector.shape_cast %47 : vector<8xf32> to vector<8x1xf32>
    %49 = vector.broadcast %48 : vector<8x1xf32> to vector<8x16xf32>
    %50 = arith.subf %46, %49 : vector<8x16xf32>
    %51 = math.exp %50 : vector<8x16xf32>
    %cst_25 = arith.constant dense<0.000000e+00> : vector<8xf32>
    %52 = vector.multi_reduction <add>, %51, %cst_25 [1] : vector<8x16xf32> to vector<8xf32>
    %53 = vector.shape_cast %52 : vector<8xf32> to vector<8x1xf32>
    %54 = tpu.reciprocal %53 {approx = true} : vector<8x1xf32> -> vector<8x1xf32>
    %55 = vector.broadcast %54 : vector<8x1xf32> to vector<8x16xf32>
    %56 = arith.mulf %51, %55 : vector<8x16xf32>
    %57 = arith.truncf %56 : vector<8x16xf32> to vector<8x16xbf16>
    %58 = vector.extract_strided_slice %22 {offsets = [0, 16], sizes = [16, 16], strides = [1, 1]} : vector<16x32xbf16> to vector<16x16xbf16>
    %cst_26 = arith.constant dense<0.000000e+00> : vector<8x16xf32>
    %59 = tpu.matmul %57, %58, %cst_26 {dimension_numbers = #tpu.dot_dimension_numbers<[1], [0], [0], [1], [0, 0, 1, 1], [], []>} : vector<8x16xbf16>, vector<16x16xbf16>, vector<8x16xf32> -> vector<8x16xf32>
    %c0_27 = arith.constant 0 : index
    %c16 = arith.constant 16 : index
    %60 = vector.load %arg20[%c0_27, %c16] : memref<8x32xf32, #tpu.memory_space<vmem>>, vector<8x16xf32>
    tpu.vector_store %arg20[%c0_27, %c16], %59 {strides = array<i32>} : memref<8x32xf32, #tpu.memory_space<vmem>>, vector<8x16xf32>,
    %c0_28 = arith.constant 0 : index
    %c0_29 = arith.constant 0 : index
    %61 = vector.load %arg20[%c0_28, %c0_29] : memref<8x32xf32, #tpu.memory_space<vmem>>, vector<8x32xf32>
    %62 = arith.truncf %61 : vector<8x32xf32> to vector<8x32xbf16>
    %c0_30 = arith.constant 0 : index
    %c0_31 = arith.constant 0 : index
    %63 = vector.load %arg9[%c0_30, %c0_31] : memref<32x32xbf16, #tpu.memory_space<vmem>>, vector<32x32xbf16>
    %cst_32 = arith.constant dense<0.000000e+00> : vector<8x32xf32>
    %64 = tpu.matmul %62, %63, %cst_32 {dimension_numbers = #tpu.dot_dimension_numbers<[1], [0], [0], [1], [0, 0, 1, 1], [], []>} : vector<8x32xbf16>, vector<32x32xbf16>, vector<8x32xf32> -> vector<8x32xf32>
    %c0_33 = arith.constant 0 : index
    %c0_34 = arith.constant 0 : index
    %65 = vector.load %arg10[%c0_33, %c0_34] : memref<1x32xf32, #tpu.memory_space<vmem>>, vector<1x32xf32>
    %66 = vector.broadcast %65 : vector<1x32xf32> to vector<8x32xf32>
    %67 = arith.addf %64, %66 : vector<8x32xf32>
    %68 = arith.addf %67, %1 : vector<8x32xf32>
    %c0_35 = arith.constant 0 : index
    %c0_36 = arith.constant 0 : index
    %69 = vector.load %arg11[%c0_35, %c0_36] : memref<1x32xf32, #tpu.memory_space<vmem>>, vector<1x32xf32>
    %c0_37 = arith.constant 0 : index
    %c0_38 = arith.constant 0 : index
    %70 = vector.load %arg12[%c0_37, %c0_38] : memref<1x32xf32, #tpu.memory_space<vmem>>, vector<1x32xf32>
    %cst_39 = arith.constant dense<0.000000e+00> : vector<8xf32>
    %71 = vector.multi_reduction <add>, %68, %cst_39 [1] : vector<8x32xf32> to vector<8xf32>
    %72 = vector.shape_cast %71 : vector<8xf32> to vector<8x1xf32>
    %cst_40 = arith.constant 3.200000e+01 : f32
    %73 = vector.broadcast %cst_40 : f32 to vector<8x1xf32>
    %74 = arith.divf %72, %73 : vector<8x1xf32>
    %75 = vector.broadcast %74 : vector<8x1xf32> to vector<8x32xf32>
    %76 = arith.subf %68, %75 : vector<8x32xf32>
    %77 = arith.mulf %76, %76 : vector<8x32xf32>
    %cst_41 = arith.constant dense<0.000000e+00> : vector<8xf32>
    %78 = vector.multi_reduction <add>, %77, %cst_41 [1] : vector<8x32xf32> to vector<8xf32>
    %79 = vector.shape_cast %78 : vector<8xf32> to vector<8x1xf32>
    %cst_42 = arith.constant 3.200000e+01 : f32
    %80 = vector.broadcast %cst_42 : f32 to vector<8x1xf32>
    %81 = arith.divf %79, %80 : vector<8x1xf32>
    %82 = vector.broadcast %74 : vector<8x1xf32> to vector<8x32xf32>
    %83 = arith.subf %68, %82 : vector<8x32xf32>
    %cst_43 = arith.constant 9.99999996E-13 : f32
    %84 = vector.broadcast %cst_43 : f32 to vector<8x1xf32>
    %85 = arith.addf %81, %84 : vector<8x1xf32>
    %86 = math.rsqrt %85 : vector<8x1xf32>
    %87 = vector.broadcast %86 : vector<8x1xf32> to vector<8x32xf32>
    %88 = arith.mulf %83, %87 : vector<8x32xf32>
    %89 = vector.broadcast %69 : vector<1x32xf32> to vector<8x32xf32>
    %90 = arith.mulf %88, %89 : vector<8x32xf32>
    %91 = vector.broadcast %70 : vector<1x32xf32> to vector<8x32xf32>
    %92 = arith.addf %90, %91 : vector<8x32xf32>
    %93 = arith.truncf %92 : vector<8x32xf32> to vector<8x32xbf16>
    %c0_44 = arith.constant 0 : index
    %c0_45 = arith.constant 0 : index
    %94 = vector.load %arg13[%c0_44, %c0_45] : memref<32x64xbf16, #tpu.memory_space<vmem>>, vector<32x64xbf16>
    %cst_46 = arith.constant dense<0.000000e+00> : vector<8x64xf32>
    %95 = tpu.matmul %93, %94, %cst_46 {dimension_numbers = #tpu.dot_dimension_numbers<[1], [0], [0], [1], [0, 0, 1, 1], [], []>} : vector<8x32xbf16>, vector<32x64xbf16>, vector<8x64xf32> -> vector<8x64xf32>
    %c0_47 = arith.constant 0 : index
    %c0_48 = arith.constant 0 : index
    %96 = vector.load %arg14[%c0_47, %c0_48] : memref<1x64xf32, #tpu.memory_space<vmem>>, vector<1x64xf32>
    %97 = vector.broadcast %96 : vector<1x64xf32> to vector<8x64xf32>
    %98 = arith.addf %95, %97 : vector<8x64xf32>
    %cst_49 = arith.constant 5.000000e-01 : f32
    %99 = vector.broadcast %cst_49 : f32 to vector<8x64xf32>
    %100 = arith.mulf %99, %98 : vector<8x64xf32>
    %cst_50 = arith.constant 4.471500e-02 : f32
    %101 = vector.broadcast %cst_50 : f32 to vector<8x64xf32>
    %102 = arith.mulf %101, %98 : vector<8x64xf32>
    %103 = arith.mulf %102, %98 : vector<8x64xf32>
    %104 = arith.mulf %103, %98 : vector<8x64xf32>
    %105 = arith.addf %98, %104 : vector<8x64xf32>
    %cst_51 = arith.constant 0.797884583 : f32
    %106 = vector.broadcast %cst_51 : f32 to vector<8x64xf32>
    %107 = arith.mulf %106, %105 : vector<8x64xf32>
    %108 = math.tanh %107 : vector<8x64xf32>
    %cst_52 = arith.constant 1.000000e+00 : f32
    %109 = vector.broadcast %cst_52 : f32 to vector<8x64xf32>
    %110 = arith.addf %109, %108 : vector<8x64xf32>
    %111 = arith.mulf %100, %110 : vector<8x64xf32>
    %112 = arith.truncf %111 : vector<8x64xf32> to vector<8x64xbf16>
    %c0_53 = arith.constant 0 : index
    %c0_54 = arith.constant 0 : index
    %113 = vector.load %arg15[%c0_53, %c0_54] : memref<64x32xbf16, #tpu.memory_space<vmem>>, vector<64x32xbf16>
    %cst_55 = arith.constant dense<0.000000e+00> : vector<8x32xf32>
    %114 = tpu.matmul %112, %113, %cst_55 {dimension_numbers = #tpu.dot_dimension_numbers<[1], [0], [0], [1], [0, 0, 1, 1], [], []>} : vector<8x64xbf16>, vector<64x32xbf16>, vector<8x32xf32> -> vector<8x32xf32>
    %c0_56 = arith.constant 0 : index
    %c0_57 = arith.constant 0 : index
    %115 = vector.load %arg16[%c0_56, %c0_57] : memref<1x32xf32, #tpu.memory_space<vmem>>, vector<1x32xf32>
    %116 = vector.broadcast %115 : vector<1x32xf32> to vector<8x32xf32>
    %117 = arith.addf %114, %116 : vector<8x32xf32>
    %118 = arith.addf %117, %92 : vector<8x32xf32>
    %c0_58 = arith.constant 0 : index
    %c0_59 = arith.constant 0 : index
    %119 = vector.load %arg17[%c0_58, %c0_59] : memref<1x32xf32, #tpu.memory_space<vmem>>, vector<1x32xf32>
    %c0_60 = arith.constant 0 : index
    %c0_61 = arith.constant 0 : index
    %120 = vector.load %arg18[%c0_60, %c0_61] : memref<1x32xf32, #tpu.memory_space<vmem>>, vector<1x32xf32>
    %cst_62 = arith.constant dense<0.000000e+00> : vector<8xf32>
    %121 = vector.multi_reduction <add>, %118, %cst_62 [1] : vector<8x32xf32> to vector<8xf32>
    %122 = vector.shape_cast %121 : vector<8xf32> to vector<8x1xf32>
    %cst_63 = arith.constant 3.200000e+01 : f32
    %123 = vector.broadcast %cst_63 : f32 to vector<8x1xf32>
    %124 = arith.divf %122, %123 : vector<8x1xf32>
    %125 = vector.broadcast %124 : vector<8x1xf32> to vector<8x32xf32>
    %126 = arith.subf %118, %125 : vector<8x32xf32>
    %127 = arith.mulf %126, %126 : vector<8x32xf32>
    %cst_64 = arith.constant dense<0.000000e+00> : vector<8xf32>
    %128 = vector.multi_reduction <add>, %127, %cst_64 [1] : vector<8x32xf32> to vector<8xf32>
    %129 = vector.shape_cast %128 : vector<8xf32> to vector<8x1xf32>
    %cst_65 = arith.constant 3.200000e+01 : f32
    %130 = vector.broadcast %cst_65 : f32 to vector<8x1xf32>
    %131 = arith.divf %129, %130 : vector<8x1xf32>
    %132 = vector.broadcast %124 : vector<8x1xf32> to vector<8x32xf32>
    %133 = arith.subf %118, %132 : vector<8x32xf32>
    %cst_66 = arith.constant 9.99999996E-13 : f32
    %134 = vector.broadcast %cst_66 : f32 to vector<8x1xf32>
    %135 = arith.addf %131, %134 : vector<8x1xf32>
    %136 = math.rsqrt %135 : vector<8x1xf32>
    %137 = vector.broadcast %136 : vector<8x1xf32> to vector<8x32xf32>
    %138 = arith.mulf %133, %137 : vector<8x32xf32>
    %139 = vector.broadcast %119 : vector<1x32xf32> to vector<8x32xf32>
    %140 = arith.mulf %138, %139 : vector<8x32xf32>
    %141 = vector.broadcast %120 : vector<1x32xf32> to vector<8x32xf32>
    %142 = arith.addf %140, %141 : vector<8x32xf32>
    %c0_67 = arith.constant 0 : index
    %c0_68 = arith.constant 0 : index
    %c0_69 = arith.constant 0 : index
    %143 = vector.load %arg19[%c0_67, %c0_68, %c0_69] : memref<1x8x32xf32, #tpu.memory_space<vmem>>, vector<1x8x32xf32>
    %144 = vector.shape_cast %143 : vector<1x8x32xf32> to vector<8x32xf32>
    %145 = vector.shape_cast %142 : vector<8x32xf32> to vector<1x8x32xf32>
    tpu.vector_store %arg19[%c0_67, %c0_68, %c0_69], %145 {strides = array<i32>} : memref<1x8x32xf32, #tpu.memory_space<vmem>>, vector<1x8x32xf32>,
    return
  }
  func.func @transform_0(%arg0: i32, %arg1: i32) -> (i32, i32, i32) {
    %c0_i32 = arith.constant 0 : i32
    %c0_i32_0 = arith.constant 0 : i32
    return %arg0, %arg1, %c0_i32 : i32, i32, i32
  }
  func.func @transform_1(%arg0: i32, %arg1: i32) -> (i32, i32, i32) {
    %c0_i32 = arith.constant 0 : i32
    %c0_i32_0 = arith.constant 0 : i32
    %c0_i32_1 = arith.constant 0 : i32
    return %arg0, %c0_i32, %c0_i32_0 : i32, i32, i32
  }
  func.func @transform_2(%arg0: i32, %arg1: i32) -> (i32, i32, i32) {
    %c0_i32 = arith.constant 0 : i32
    %c0_i32_0 = arith.constant 0 : i32
    %c0_i32_1 = arith.constant 0 : i32
    return %arg0, %c0_i32, %c0_i32_0 : i32, i32, i32
  }
  func.func @transform_3(%arg0: i32, %arg1: i32) -> (i32, i32) {
    %c0_i32 = arith.constant 0 : i32
    %c0_i32_0 = arith.constant 0 : i32
    %c0_i32_1 = arith.constant 0 : i32
    return %c0_i32, %c0_i32_0 : i32, i32
  }
  func.func @transform_4(%arg0: i32, %arg1: i32) -> (i32, i32) {
    %c0_i32 = arith.constant 0 : i32
    %c0_i32_0 = arith.constant 0 : i32
    %c0_i32_1 = arith.constant 0 : i32
    return %c0_i32, %c0_i32_0 : i32, i32
  }
  func.func @transform_5(%arg0: i32, %arg1: i32) -> (i32, i32) {
    %c0_i32 = arith.constant 0 : i32
    %c0_i32_0 = arith.constant 0 : i32
    %c0_i32_1 = arith.constant 0 : i32
    return %c0_i32, %c0_i32_0 : i32, i32
  }
  func.func @transform_6(%arg0: i32, %arg1: i32) -> (i32, i32) {
    %c0_i32 = arith.constant 0 : i32
    %c0_i32_0 = arith.constant 0 : i32
    %c0_i32_1 = arith.constant 0 : i32
    return %c0_i32, %c0_i32_0 : i32, i32
  }
  func.func @transform_7(%arg0: i32, %arg1: i32) -> (i32, i32) {
    %c0_i32 = arith.constant 0 : i32
    %c0_i32_0 = arith.constant 0 : i32
    %c0_i32_1 = arith.constant 0 : i32
    return %c0_i32, %c0_i32_0 : i32, i32
  }
  func.func @transform_8(%arg0: i32, %arg1: i32) -> (i32, i32) {
    %c0_i32 = arith.constant 0 : i32
    %c0_i32_0 = arith.constant 0 : i32
    %c0_i32_1 = arith.constant 0 : i32
    return %c0_i32, %c0_i32_0 : i32, i32
  }
  func.func @transform_9(%arg0: i32, %arg1: i32) -> (i32, i32) {
    %c0_i32 = arith.constant 0 : i32
    %c0_i32_0 = arith.constant 0 : i32
    %c0_i32_1 = arith.constant 0 : i32
    return %c0_i32, %c0_i32_0 : i32, i32
  }
  func.func @transform_10(%arg0: i32, %arg1: i32) -> (i32, i32) {
    %c0_i32 = arith.constant 0 : i32
    %c0_i32_0 = arith.constant 0 : i32
    %c0_i32_1 = arith.constant 0 : i32
    return %c0_i32, %c0_i32_0 : i32, i32
  }
  func.func @transform_11(%arg0: i32, %arg1: i32) -> (i32, i32) {
    %c0_i32 = arith.constant 0 : i32
    %c0_i32_0 = arith.constant 0 : i32
    %c0_i32_1 = arith.constant 0 : i32
    return %c0_i32, %c0_i32_0 : i32, i32
  }
  func.func @transform_12(%arg0: i32, %arg1: i32) -> (i32, i32) {
    %c0_i32 = arith.constant 0 : i32
    %c0_i32_0 = arith.constant 0 : i32
    %c0_i32_1 = arith.constant 0 : i32
    return %c0_i32, %c0_i32_0 : i32, i32
  }
  func.func @transform_13(%arg0: i32, %arg1: i32) -> (i32, i32) {
    %c0_i32 = arith.constant 0 : i32
    %c0_i32_0 = arith.constant 0 : i32
    %c0_i32_1 = arith.constant 0 : i32
    return %c0_i32, %c0_i32_0 : i32, i32
  }
  func.func @transform_14(%arg0: i32, %arg1: i32) -> (i32, i32) {
    %c0_i32 = arith.constant 0 : i32
    %c0_i32_0 = arith.constant 0 : i32
    %c0_i32_1 = arith.constant 0 : i32
    return %c0_i32, %c0_i32_0 : i32, i32
  }
  func.func @transform_15(%arg0: i32, %arg1: i32) -> (i32, i32) {
    %c0_i32 = arith.constant 0 : i32
    %c0_i32_0 = arith.constant 0 : i32
    %c0_i32_1 = arith.constant 0 : i32
    return %c0_i32, %c0_i32_0 : i32, i32
  }
  func.func @transform_16(%arg0: i32, %arg1: i32) -> (i32, i32) {
    %c0_i32 = arith.constant 0 : i32
    %c0_i32_0 = arith.constant 0 : i32
    %c0_i32_1 = arith.constant 0 : i32
    return %c0_i32, %c0_i32_0 : i32, i32
  }
  func.func @transform_17(%arg0: i32, %arg1: i32) -> (i32, i32, i32) {
    %c0_i32 = arith.constant 0 : i32
    %c0_i32_0 = arith.constant 0 : i32
    return %arg0, %arg1, %c0_i32 : i32, i32, i32
  }
}

module attributes {stable_mosaic.version = 11 : i64} {
  func.func @kernel(%arg0: i32, %arg1: i32, %arg2: memref<1x8x32xf32, #tpu.memory_space<vmem>>, %arg3: memref<1x16x32xf32, #tpu.memory_space<vmem>>, %arg4: memref<1x1x16xf32, #tpu.memory_space<vmem>>, %arg5: memref<32x32xbf16, #tpu.memory_space<vmem>>, %arg6: memref<1x32xf32, #tpu.memory_space<vmem>>, %arg7: memref<32x64xbf16, #tpu.memory_space<vmem>>, %arg8: memref<1x64xf32, #tpu.memory_space<vmem>>, %arg9: memref<32x32xbf16, #tpu.memory_space<vmem>>, %arg10: memref<1x32xf32, #tpu.memory_space<vmem>>, %arg11: memref<1x32xf32, #tpu.memory_space<vmem>>, %arg12: memref<1x32xf32, #tpu.memory_space<vmem>>, %arg13: memref<32x64xbf16, #tpu.memory_space<vmem>>, %arg14: memref<1x64xf32, #tpu.memory_space<vmem>>, %arg15: memref<64x32xbf16, #tpu.memory_space<vmem>>, %arg16: memref<1x32xf32, #tpu.memory_space<vmem>>, %arg17: memref<1x32xf32, #tpu.memory_space<vmem>>, %arg18: memref<1x32xf32, #tpu.memory_space<vmem>>, %arg19: memref<32x128xbf16, #tpu.memory_space<vmem>>, %arg20: memref<1x128xf32, #tpu.memory_space<vmem>>, %arg21: memref<1x8x128xf32, #tpu.memory_space<vmem>>, %arg22: memref<8x32xf32, #tpu.memory_space<vmem>>) attributes {dimension_semantics = [#tpu.dimension_semantics<parallel>, #tpu.dimension_semantics<parallel>], iteration_bounds = array<i64: 2, 2>, scalar_prefetch = 0 : i64, scratch_operands = 1 : i64, tpu.core_type = #tpu.core_type<tc>, window_params = [{transform_indices = @transform_0, window_bounds = array<i64: 1, 8, 32>}, {transform_indices = @transform_1, window_bounds = array<i64: 1, 16, 32>}, {transform_indices = @transform_2, window_bounds = array<i64: 1, 1, 16>}, {pipeline_mode = #tpu.pipeline_mode<synchronous>, transform_indices = @transform_3, window_bounds = array<i64: 32, 32>}, {pipeline_mode = #tpu.pipeline_mode<synchronous>, transform_indices = @transform_4, window_bounds = array<i64: 1, 32>}, {pipeline_mode = #tpu.pipeline_mode<synchronous>, transform_indices = @transform_5, window_bounds = array<i64: 32, 64>}, {pipeline_mode = #tpu.pipeline_mode<synchronous>, transform_indices = @transform_6, window_bounds = array<i64: 1, 64>}, {pipeline_mode = #tpu.pipeline_mode<synchronous>, transform_indices = @transform_7, window_bounds = array<i64: 32, 32>}, {pipeline_mode = #tpu.pipeline_mode<synchronous>, transform_indices = @transform_8, window_bounds = array<i64: 1, 32>}, {pipeline_mode = #tpu.pipeline_mode<synchronous>, transform_indices = @transform_9, window_bounds = array<i64: 1, 32>}, {pipeline_mode = #tpu.pipeline_mode<synchronous>, transform_indices = @transform_10, window_bounds = array<i64: 1, 32>}, {pipeline_mode = #tpu.pipeline_mode<synchronous>, transform_indices = @transform_11, window_bounds = array<i64: 32, 64>}, {pipeline_mode = #tpu.pipeline_mode<synchronous>, transform_indices = @transform_12, window_bounds = array<i64: 1, 64>}, {pipeline_mode = #tpu.pipeline_mode<synchronous>, transform_indices = @transform_13, window_bounds = array<i64: 64, 32>}, {pipeline_mode = #tpu.pipeline_mode<synchronous>, transform_indices = @transform_14, window_bounds = array<i64: 1, 32>}, {pipeline_mode = #tpu.pipeline_mode<synchronous>, transform_indices = @transform_15, window_bounds = array<i64: 1, 32>}, {pipeline_mode = #tpu.pipeline_mode<synchronous>, transform_indices = @transform_16, window_bounds = array<i64: 1, 32>}, {pipeline_mode = #tpu.pipeline_mode<synchronous>, transform_indices = @transform_17, window_bounds = array<i64: 32, 128>}, {pipeline_mode = #tpu.pipeline_mode<synchronous>, transform_indices = @transform_18, window_bounds = array<i64: 1, 128>}, {transform_indices = @transform_19, window_bounds = array<i64: 1, 8, 128>}]} {
    %c0 = arith.constant 0 : index
    %c0_0 = arith.constant 0 : index
    %c0_1 = arith.constant 0 : index
    %0 = vector.load %arg2[%c0, %c0_0, %c0_1] : memref<1x8x32xf32, #tpu.memory_space<vmem>>, vector<1x8x32xf32>
    %1 = vector.shape_cast %0 : vector<1x8x32xf32> to vector<8x32xf32>
    %c0_2 = arith.constant 0 : index
    %c0_3 = arith.constant 0 : index
    %c0_4 = arith.constant 0 : index
    %2 = vector.load %arg3[%c0_2, %c0_3, %c0_4] : memref<1x16x32xf32, #tpu.memory_space<vmem>>, vector<1x16x32xf32>
    %3 = vector.shape_cast %2 : vector<1x16x32xf32> to vector<16x32xf32>
    %c0_5 = arith.constant 0 : index
    %c0_6 = arith.constant 0 : index
    %c0_7 = arith.constant 0 : index
    %4 = vector.load %arg4[%c0_5, %c0_6, %c0_7] : memref<1x1x16xf32, #tpu.memory_space<vmem>>, vector<1x1x16xf32>
    %5 = vector.shape_cast %4 : vector<1x1x16xf32> to vector<1x16xf32>
    %6 = arith.truncf %1 : vector<8x32xf32> to vector<8x32xbf16>
    %c0_8 = arith.constant 0 : index
    %c0_9 = arith.constant 0 : index
    %7 = vector.load %arg5[%c0_8, %c0_9] : memref<32x32xbf16, #tpu.memory_space<vmem>>, vector<32x32xbf16>
    %cst = arith.constant dense<0.000000e+00> : vector<8x32xf32>
    %8 = tpu.matmul %6, %7, %cst {dimension_numbers = #tpu.dot_dimension_numbers<[1], [0], [0], [1], [0, 0, 1, 1], [], []>} : vector<8x32xbf16>, vector<32x32xbf16>, vector<8x32xf32> -> vector<8x32xf32>
    %c0_10 = arith.constant 0 : index
    %c0_11 = arith.constant 0 : index
    %9 = vector.load %arg6[%c0_10, %c0_11] : memref<1x32xf32, #tpu.memory_space<vmem>>, vector<1x32xf32>
    %10 = vector.broadcast %9 : vector<1x32xf32> to vector<8x32xf32>
    %11 = arith.addf %8, %10 : vector<8x32xf32>
    %12 = arith.truncf %3 : vector<16x32xf32> to vector<16x32xbf16>
    %c0_12 = arith.constant 0 : index
    %c0_13 = arith.constant 0 : index
    %13 = vector.load %arg7[%c0_12, %c0_13] : memref<32x64xbf16, #tpu.memory_space<vmem>>, vector<32x64xbf16>
    %cst_14 = arith.constant dense<0.000000e+00> : vector<16x64xf32>
    %14 = tpu.matmul %12, %13, %cst_14 {dimension_numbers = #tpu.dot_dimension_numbers<[1], [0], [0], [1], [0, 0, 1, 1], [], []>} : vector<16x32xbf16>, vector<32x64xbf16>, vector<16x64xf32> -> vector<16x64xf32>
    %c0_15 = arith.constant 0 : index
    %c0_16 = arith.constant 0 : index
    %15 = vector.load %arg8[%c0_15, %c0_16] : memref<1x64xf32, #tpu.memory_space<vmem>>, vector<1x64xf32>
    %16 = vector.broadcast %15 : vector<1x64xf32> to vector<16x64xf32>
    %17 = arith.addf %14, %16 : vector<16x64xf32>
    %18 = arith.truncf %11 : vector<8x32xf32> to vector<8x32xbf16>
    %19 = vector.extract_strided_slice %17 {offsets = [0, 0], sizes = [16, 32], strides = [1, 1]} : vector<16x64xf32> to vector<16x32xf32>
    %20 = arith.truncf %19 : vector<16x32xf32> to vector<16x32xbf16>
    %21 = vector.extract_strided_slice %17 {offsets = [0, 32], sizes = [16, 32], strides = [1, 1]} : vector<16x64xf32> to vector<16x32xf32>
    %22 = arith.truncf %21 : vector<16x32xf32> to vector<16x32xbf16>
    %23 = vector.extract_strided_slice %18 {offsets = [0, 0], sizes = [8, 16], strides = [1, 1]} : vector<8x32xbf16> to vector<8x16xbf16>
    %24 = vector.extract_strided_slice %20 {offsets = [0, 0], sizes = [16, 16], strides = [1, 1]} : vector<16x32xbf16> to vector<16x16xbf16>
    %cst_17 = arith.constant dense<0.000000e+00> : vector<8x16xf32>
    %25 = tpu.matmul %23, %24, %cst_17 {dimension_numbers = #tpu.dot_dimension_numbers<[1], [1], [0], [0], [0, 0, 1, 0], [], []>} : vector<8x16xbf16>, vector<16x16xbf16>, vector<8x16xf32> -> vector<8x16xf32>
    %26 = vector.broadcast %5 : vector<1x16xf32> to vector<8x16xf32>
    %27 = arith.addf %25, %26 : vector<8x16xf32>
    %cst_18 = arith.constant dense<0xFF800000> : vector<8xf32>
    %28 = vector.multi_reduction <maximumf>, %27, %cst_18 [1] : vector<8x16xf32> to vector<8xf32>
    %29 = vector.shape_cast %28 : vector<8xf32> to vector<8x1xf32>
    %30 = vector.broadcast %29 : vector<8x1xf32> to vector<8x16xf32>
    %31 = arith.subf %27, %30 : vector<8x16xf32>
    %32 = math.exp %31 : vector<8x16xf32>
    %cst_19 = arith.constant dense<0.000000e+00> : vector<8xf32>
    %33 = vector.multi_reduction <add>, %32, %cst_19 [1] : vector<8x16xf32> to vector<8xf32>
    %34 = vector.shape_cast %33 : vector<8xf32> to vector<8x1xf32>
    %35 = tpu.reciprocal %34 {approx = true} : vector<8x1xf32> -> vector<8x1xf32>
    %36 = vector.broadcast %35 : vector<8x1xf32> to vector<8x16xf32>
    %37 = arith.mulf %32, %36 : vector<8x16xf32>
    %38 = arith.truncf %37 : vector<8x16xf32> to vector<8x16xbf16>
    %39 = vector.extract_strided_slice %22 {offsets = [0, 0], sizes = [16, 16], strides = [1, 1]} : vector<16x32xbf16> to vector<16x16xbf16>
    %cst_20 = arith.constant dense<0.000000e+00> : vector<8x16xf32>
    %40 = tpu.matmul %38, %39, %cst_20 {dimension_numbers = #tpu.dot_dimension_numbers<[1], [0], [0], [1], [0, 0, 1, 1], [], []>} : vector<8x16xbf16>, vector<16x16xbf16>, vector<8x16xf32> -> vector<8x16xf32>
    %c0_21 = arith.constant 0 : index
    %c0_22 = arith.constant 0 : index
    %41 = vector.load %arg22[%c0_21, %c0_22] : memref<8x32xf32, #tpu.memory_space<vmem>>, vector<8x16xf32>
    tpu.vector_store %arg22[%c0_21, %c0_22], %40 {strides = array<i32>} : memref<8x32xf32, #tpu.memory_space<vmem>>, vector<8x16xf32>,
    %42 = vector.extract_strided_slice %18 {offsets = [0, 16], sizes = [8, 16], strides = [1, 1]} : vector<8x32xbf16> to vector<8x16xbf16>
    %43 = vector.extract_strided_slice %20 {offsets = [0, 16], sizes = [16, 16], strides = [1, 1]} : vector<16x32xbf16> to vector<16x16xbf16>
    %cst_23 = arith.constant dense<0.000000e+00> : vector<8x16xf32>
    %44 = tpu.matmul %42, %43, %cst_23 {dimension_numbers = #tpu.dot_dimension_numbers<[1], [1], [0], [0], [0, 0, 1, 0], [], []>} : vector<8x16xbf16>, vector<16x16xbf16>, vector<8x16xf32> -> vector<8x16xf32>
    %45 = vector.broadcast %5 : vector<1x16xf32> to vector<8x16xf32>
    %46 = arith.addf %44, %45 : vector<8x16xf32>
    %cst_24 = arith.constant dense<0xFF800000> : vector<8xf32>
    %47 = vector.multi_reduction <maximumf>, %46, %cst_24 [1] : vector<8x16xf32> to vector<8xf32>
    %48 = vector.shape_cast %47 : vector<8xf32> to vector<8x1xf32>
    %49 = vector.broadcast %48 : vector<8x1xf32> to vector<8x16xf32>
    %50 = arith.subf %46, %49 : vector<8x16xf32>
    %51 = math.exp %50 : vector<8x16xf32>
    %cst_25 = arith.constant dense<0.000000e+00> : vector<8xf32>
    %52 = vector.multi_reduction <add>, %51, %cst_25 [1] : vector<8x16xf32> to vector<8xf32>
    %53 = vector.shape_cast %52 : vector<8xf32> to vector<8x1xf32>
    %54 = tpu.reciprocal %53 {approx = true} : vector<8x1xf32> -> vector<8x1xf32>
    %55 = vector.broadcast %54 : vector<8x1xf32> to vector<8x16xf32>
    %56 = arith.mulf %51, %55 : vector<8x16xf32>
    %57 = arith.truncf %56 : vector<8x16xf32> to vector<8x16xbf16>
    %58 = vector.extract_strided_slice %22 {offsets = [0, 16], sizes = [16, 16], strides = [1, 1]} : vector<16x32xbf16> to vector<16x16xbf16>
    %cst_26 = arith.constant dense<0.000000e+00> : vector<8x16xf32>
    %59 = tpu.matmul %57, %58, %cst_26 {dimension_numbers = #tpu.dot_dimension_numbers<[1], [0], [0], [1], [0, 0, 1, 1], [], []>} : vector<8x16xbf16>, vector<16x16xbf16>, vector<8x16xf32> -> vector<8x16xf32>
    %c0_27 = arith.constant 0 : index
    %c16 = arith.constant 16 : index
    %60 = vector.load %arg22[%c0_27, %c16] : memref<8x32xf32, #tpu.memory_space<vmem>>, vector<8x16xf32>
    tpu.vector_store %arg22[%c0_27, %c16], %59 {strides = array<i32>} : memref<8x32xf32, #tpu.memory_space<vmem>>, vector<8x16xf32>,
    %c0_28 = arith.constant 0 : index
    %c0_29 = arith.constant 0 : index
    %61 = vector.load %arg22[%c0_28, %c0_29] : memref<8x32xf32, #tpu.memory_space<vmem>>, vector<8x32xf32>
    %62 = arith.truncf %61 : vector<8x32xf32> to vector<8x32xbf16>
    %c0_30 = arith.constant 0 : index
    %c0_31 = arith.constant 0 : index
    %63 = vector.load %arg9[%c0_30, %c0_31] : memref<32x32xbf16, #tpu.memory_space<vmem>>, vector<32x32xbf16>
    %cst_32 = arith.constant dense<0.000000e+00> : vector<8x32xf32>
    %64 = tpu.matmul %62, %63, %cst_32 {dimension_numbers = #tpu.dot_dimension_numbers<[1], [0], [0], [1], [0, 0, 1, 1], [], []>} : vector<8x32xbf16>, vector<32x32xbf16>, vector<8x32xf32> -> vector<8x32xf32>
    %c0_33 = arith.constant 0 : index
    %c0_34 = arith.constant 0 : index
    %65 = vector.load %arg10[%c0_33, %c0_34] : memref<1x32xf32, #tpu.memory_space<vmem>>, vector<1x32xf32>
    %66 = vector.broadcast %65 : vector<1x32xf32> to vector<8x32xf32>
    %67 = arith.addf %64, %66 : vector<8x32xf32>
    %68 = arith.addf %67, %1 : vector<8x32xf32>
    %c0_35 = arith.constant 0 : index
    %c0_36 = arith.constant 0 : index
    %69 = vector.load %arg11[%c0_35, %c0_36] : memref<1x32xf32, #tpu.memory_space<vmem>>, vector<1x32xf32>
    %c0_37 = arith.constant 0 : index
    %c0_38 = arith.constant 0 : index
    %70 = vector.load %arg12[%c0_37, %c0_38] : memref<1x32xf32, #tpu.memory_space<vmem>>, vector<1x32xf32>
    %cst_39 = arith.constant dense<0.000000e+00> : vector<8xf32>
    %71 = vector.multi_reduction <add>, %68, %cst_39 [1] : vector<8x32xf32> to vector<8xf32>
    %72 = vector.shape_cast %71 : vector<8xf32> to vector<8x1xf32>
    %cst_40 = arith.constant 3.200000e+01 : f32
    %73 = vector.broadcast %cst_40 : f32 to vector<8x1xf32>
    %74 = arith.divf %72, %73 : vector<8x1xf32>
    %75 = vector.broadcast %74 : vector<8x1xf32> to vector<8x32xf32>
    %76 = arith.subf %68, %75 : vector<8x32xf32>
    %77 = arith.mulf %76, %76 : vector<8x32xf32>
    %cst_41 = arith.constant dense<0.000000e+00> : vector<8xf32>
    %78 = vector.multi_reduction <add>, %77, %cst_41 [1] : vector<8x32xf32> to vector<8xf32>
    %79 = vector.shape_cast %78 : vector<8xf32> to vector<8x1xf32>
    %cst_42 = arith.constant 3.200000e+01 : f32
    %80 = vector.broadcast %cst_42 : f32 to vector<8x1xf32>
    %81 = arith.divf %79, %80 : vector<8x1xf32>
    %82 = vector.broadcast %74 : vector<8x1xf32> to vector<8x32xf32>
    %83 = arith.subf %68, %82 : vector<8x32xf32>
    %cst_43 = arith.constant 9.99999996E-13 : f32
    %84 = vector.broadcast %cst_43 : f32 to vector<8x1xf32>
    %85 = arith.addf %81, %84 : vector<8x1xf32>
    %86 = math.rsqrt %85 : vector<8x1xf32>
    %87 = vector.broadcast %86 : vector<8x1xf32> to vector<8x32xf32>
    %88 = arith.mulf %83, %87 : vector<8x32xf32>
    %89 = vector.broadcast %69 : vector<1x32xf32> to vector<8x32xf32>
    %90 = arith.mulf %88, %89 : vector<8x32xf32>
    %91 = vector.broadcast %70 : vector<1x32xf32> to vector<8x32xf32>
    %92 = arith.addf %90, %91 : vector<8x32xf32>
    %93 = arith.truncf %92 : vector<8x32xf32> to vector<8x32xbf16>
    %c0_44 = arith.constant 0 : index
    %c0_45 = arith.constant 0 : index
    %94 = vector.load %arg13[%c0_44, %c0_45] : memref<32x64xbf16, #tpu.memory_space<vmem>>, vector<32x64xbf16>
    %cst_46 = arith.constant dense<0.000000e+00> : vector<8x64xf32>
    %95 = tpu.matmul %93, %94, %cst_46 {dimension_numbers = #tpu.dot_dimension_numbers<[1], [0], [0], [1], [0, 0, 1, 1], [], []>} : vector<8x32xbf16>, vector<32x64xbf16>, vector<8x64xf32> -> vector<8x64xf32>
    %c0_47 = arith.constant 0 : index
    %c0_48 = arith.constant 0 : index
    %96 = vector.load %arg14[%c0_47, %c0_48] : memref<1x64xf32, #tpu.memory_space<vmem>>, vector<1x64xf32>
    %97 = vector.broadcast %96 : vector<1x64xf32> to vector<8x64xf32>
    %98 = arith.addf %95, %97 : vector<8x64xf32>
    %cst_49 = arith.constant 5.000000e-01 : f32
    %99 = vector.broadcast %cst_49 : f32 to vector<8x64xf32>
    %100 = arith.mulf %99, %98 : vector<8x64xf32>
    %cst_50 = arith.constant 4.471500e-02 : f32
    %101 = vector.broadcast %cst_50 : f32 to vector<8x64xf32>
    %102 = arith.mulf %101, %98 : vector<8x64xf32>
    %103 = arith.mulf %102, %98 : vector<8x64xf32>
    %104 = arith.mulf %103, %98 : vector<8x64xf32>
    %105 = arith.addf %98, %104 : vector<8x64xf32>
    %cst_51 = arith.constant 0.797884583 : f32
    %106 = vector.broadcast %cst_51 : f32 to vector<8x64xf32>
    %107 = arith.mulf %106, %105 : vector<8x64xf32>
    %108 = math.tanh %107 : vector<8x64xf32>
    %cst_52 = arith.constant 1.000000e+00 : f32
    %109 = vector.broadcast %cst_52 : f32 to vector<8x64xf32>
    %110 = arith.addf %109, %108 : vector<8x64xf32>
    %111 = arith.mulf %100, %110 : vector<8x64xf32>
    %112 = arith.truncf %111 : vector<8x64xf32> to vector<8x64xbf16>
    %c0_53 = arith.constant 0 : index
    %c0_54 = arith.constant 0 : index
    %113 = vector.load %arg15[%c0_53, %c0_54] : memref<64x32xbf16, #tpu.memory_space<vmem>>, vector<64x32xbf16>
    %cst_55 = arith.constant dense<0.000000e+00> : vector<8x32xf32>
    %114 = tpu.matmul %112, %113, %cst_55 {dimension_numbers = #tpu.dot_dimension_numbers<[1], [0], [0], [1], [0, 0, 1, 1], [], []>} : vector<8x64xbf16>, vector<64x32xbf16>, vector<8x32xf32> -> vector<8x32xf32>
    %c0_56 = arith.constant 0 : index
    %c0_57 = arith.constant 0 : index
    %115 = vector.load %arg16[%c0_56, %c0_57] : memref<1x32xf32, #tpu.memory_space<vmem>>, vector<1x32xf32>
    %116 = vector.broadcast %115 : vector<1x32xf32> to vector<8x32xf32>
    %117 = arith.addf %114, %116 : vector<8x32xf32>
    %118 = arith.addf %117, %92 : vector<8x32xf32>
    %c0_58 = arith.constant 0 : index
    %c0_59 = arith.constant 0 : index
    %119 = vector.load %arg17[%c0_58, %c0_59] : memref<1x32xf32, #tpu.memory_space<vmem>>, vector<1x32xf32>
    %c0_60 = arith.constant 0 : index
    %c0_61 = arith.constant 0 : index
    %120 = vector.load %arg18[%c0_60, %c0_61] : memref<1x32xf32, #tpu.memory_space<vmem>>, vector<1x32xf32>
    %cst_62 = arith.constant dense<0.000000e+00> : vector<8xf32>
    %121 = vector.multi_reduction <add>, %118, %cst_62 [1] : vector<8x32xf32> to vector<8xf32>
    %122 = vector.shape_cast %121 : vector<8xf32> to vector<8x1xf32>
    %cst_63 = arith.constant 3.200000e+01 : f32
    %123 = vector.broadcast %cst_63 : f32 to vector<8x1xf32>
    %124 = arith.divf %122, %123 : vector<8x1xf32>
    %125 = vector.broadcast %124 : vector<8x1xf32> to vector<8x32xf32>
    %126 = arith.subf %118, %125 : vector<8x32xf32>
    %127 = arith.mulf %126, %126 : vector<8x32xf32>
    %cst_64 = arith.constant dense<0.000000e+00> : vector<8xf32>
    %128 = vector.multi_reduction <add>, %127, %cst_64 [1] : vector<8x32xf32> to vector<8xf32>
    %129 = vector.shape_cast %128 : vector<8xf32> to vector<8x1xf32>
    %cst_65 = arith.constant 3.200000e+01 : f32
    %130 = vector.broadcast %cst_65 : f32 to vector<8x1xf32>
    %131 = arith.divf %129, %130 : vector<8x1xf32>
    %132 = vector.broadcast %124 : vector<8x1xf32> to vector<8x32xf32>
    %133 = arith.subf %118, %132 : vector<8x32xf32>
    %cst_66 = arith.constant 9.99999996E-13 : f32
    %134 = vector.broadcast %cst_66 : f32 to vector<8x1xf32>
    %135 = arith.addf %131, %134 : vector<8x1xf32>
    %136 = math.rsqrt %135 : vector<8x1xf32>
    %137 = vector.broadcast %136 : vector<8x1xf32> to vector<8x32xf32>
    %138 = arith.mulf %133, %137 : vector<8x32xf32>
    %139 = vector.broadcast %119 : vector<1x32xf32> to vector<8x32xf32>
    %140 = arith.mulf %138, %139 : vector<8x32xf32>
    %141 = vector.broadcast %120 : vector<1x32xf32> to vector<8x32xf32>
    %142 = arith.addf %140, %141 : vector<8x32xf32>
    %143 = arith.truncf %142 : vector<8x32xf32> to vector<8x32xbf16>
    %c0_67 = arith.constant 0 : index
    %c0_68 = arith.constant 0 : index
    %144 = vector.load %arg19[%c0_67, %c0_68] : memref<32x128xbf16, #tpu.memory_space<vmem>>, vector<32x128xbf16>
    %cst_69 = arith.constant dense<0.000000e+00> : vector<8x128xf32>
    %145 = tpu.matmul %143, %144, %cst_69 {dimension_numbers = #tpu.dot_dimension_numbers<[1], [0], [0], [1], [0, 0, 1, 1], [], []>} : vector<8x32xbf16>, vector<32x128xbf16>, vector<8x128xf32> -> vector<8x128xf32>
    %c0_70 = arith.constant 0 : index
    %c0_71 = arith.constant 0 : index
    %146 = vector.load %arg20[%c0_70, %c0_71] : memref<1x128xf32, #tpu.memory_space<vmem>>, vector<1x128xf32>
    %147 = vector.broadcast %146 : vector<1x128xf32> to vector<8x128xf32>
    %148 = arith.addf %145, %147 : vector<8x128xf32>
    %c0_72 = arith.constant 0 : index
    %c0_73 = arith.constant 0 : index
    %c0_74 = arith.constant 0 : index
    %149 = vector.load %arg21[%c0_72, %c0_73, %c0_74] : memref<1x8x128xf32, #tpu.memory_space<vmem>>, vector<1x8x128xf32>
    %150 = vector.shape_cast %149 : vector<1x8x128xf32> to vector<8x128xf32>
    %151 = vector.shape_cast %148 : vector<8x128xf32> to vector<1x8x128xf32>
    tpu.vector_store %arg21[%c0_72, %c0_73, %c0_74], %151 {strides = array<i32>} : memref<1x8x128xf32, #tpu.memory_space<vmem>>, vector<1x8x128xf32>,
    return
  }
  func.func @transform_0(%arg0: i32, %arg1: i32) -> (i32, i32, i32) {
    %c0_i32 = arith.constant 0 : i32
    %c0_i32_0 = arith.constant 0 : i32
    return %arg0, %arg1, %c0_i32 : i32, i32, i32
  }
  func.func @transform_1(%arg0: i32, %arg1: i32) -> (i32, i32, i32) {
    %c0_i32 = arith.constant 0 : i32
    %c0_i32_0 = arith.constant 0 : i32
    %c0_i32_1 = arith.constant 0 : i32
    return %arg0, %c0_i32, %c0_i32_0 : i32, i32, i32
  }
  func.func @transform_2(%arg0: i32, %arg1: i32) -> (i32, i32, i32) {
    %c0_i32 = arith.constant 0 : i32
    %c0_i32_0 = arith.constant 0 : i32
    %c0_i32_1 = arith.constant 0 : i32
    return %arg0, %c0_i32, %c0_i32_0 : i32, i32, i32
  }
  func.func @transform_3(%arg0: i32, %arg1: i32) -> (i32, i32) {
    %c0_i32 = arith.constant 0 : i32
    %c0_i32_0 = arith.constant 0 : i32
    %c0_i32_1 = arith.constant 0 : i32
    return %c0_i32, %c0_i32_0 : i32, i32
  }
  func.func @transform_4(%arg0: i32, %arg1: i32) -> (i32, i32) {
    %c0_i32 = arith.constant 0 : i32
    %c0_i32_0 = arith.constant 0 : i32
    %c0_i32_1 = arith.constant 0 : i32
    return %c0_i32, %c0_i32_0 : i32, i32
  }
  func.func @transform_5(%arg0: i32, %arg1: i32) -> (i32, i32) {
    %c0_i32 = arith.constant 0 : i32
    %c0_i32_0 = arith.constant 0 : i32
    %c0_i32_1 = arith.constant 0 : i32
    return %c0_i32, %c0_i32_0 : i32, i32
  }
  func.func @transform_6(%arg0: i32, %arg1: i32) -> (i32, i32) {
    %c0_i32 = arith.constant 0 : i32
    %c0_i32_0 = arith.constant 0 : i32
    %c0_i32_1 = arith.constant 0 : i32
    return %c0_i32, %c0_i32_0 : i32, i32
  }
  func.func @transform_7(%arg0: i32, %arg1: i32) -> (i32, i32) {
    %c0_i32 = arith.constant 0 : i32
    %c0_i32_0 = arith.constant 0 : i32
    %c0_i32_1 = arith.constant 0 : i32
    return %c0_i32, %c0_i32_0 : i32, i32
  }
  func.func @transform_8(%arg0: i32, %arg1: i32) -> (i32, i32) {
    %c0_i32 = arith.constant 0 : i32
    %c0_i32_0 = arith.constant 0 : i32
    %c0_i32_1 = arith.constant 0 : i32
    return %c0_i32, %c0_i32_0 : i32, i32
  }
  func.func @transform_9(%arg0: i32, %arg1: i32) -> (i32, i32) {
    %c0_i32 = arith.constant 0 : i32
    %c0_i32_0 = arith.constant 0 : i32
    %c0_i32_1 = arith.constant 0 : i32
    return %c0_i32, %c0_i32_0 : i32, i32
  }
  func.func @transform_10(%arg0: i32, %arg1: i32) -> (i32, i32) {
    %c0_i32 = arith.constant 0 : i32
    %c0_i32_0 = arith.constant 0 : i32
    %c0_i32_1 = arith.constant 0 : i32
    return %c0_i32, %c0_i32_0 : i32, i32
  }
  func.func @transform_11(%arg0: i32, %arg1: i32) -> (i32, i32) {
    %c0_i32 = arith.constant 0 : i32
    %c0_i32_0 = arith.constant 0 : i32
    %c0_i32_1 = arith.constant 0 : i32
    return %c0_i32, %c0_i32_0 : i32, i32
  }
  func.func @transform_12(%arg0: i32, %arg1: i32) -> (i32, i32) {
    %c0_i32 = arith.constant 0 : i32
    %c0_i32_0 = arith.constant 0 : i32
    %c0_i32_1 = arith.constant 0 : i32
    return %c0_i32, %c0_i32_0 : i32, i32
  }
  func.func @transform_13(%arg0: i32, %arg1: i32) -> (i32, i32) {
    %c0_i32 = arith.constant 0 : i32
    %c0_i32_0 = arith.constant 0 : i32
    %c0_i32_1 = arith.constant 0 : i32
    return %c0_i32, %c0_i32_0 : i32, i32
  }
  func.func @transform_14(%arg0: i32, %arg1: i32) -> (i32, i32) {
    %c0_i32 = arith.constant 0 : i32
    %c0_i32_0 = arith.constant 0 : i32
    %c0_i32_1 = arith.constant 0 : i32
    return %c0_i32, %c0_i32_0 : i32, i32
  }
  func.func @transform_15(%arg0: i32, %arg1: i32) -> (i32, i32) {
    %c0_i32 = arith.constant 0 : i32
    %c0_i32_0 = arith.constant 0 : i32
    %c0_i32_1 = arith.constant 0 : i32
    return %c0_i32, %c0_i32_0 : i32, i32
  }
  func.func @transform_16(%arg0: i32, %arg1: i32) -> (i32, i32) {
    %c0_i32 = arith.constant 0 : i32
    %c0_i32_0 = arith.constant 0 : i32
    %c0_i32_1 = arith.constant 0 : i32
    return %c0_i32, %c0_i32_0 : i32, i32
  }
  func.func @transform_17(%arg0: i32, %arg1: i32) -> (i32, i32) {
    %c0_i32 = arith.constant 0 : i32
    %c0_i32_0 = arith.constant 0 : i32
    %c0_i32_1 = arith.constant 0 : i32
    return %c0_i32, %c0_i32_0 : i32, i32
  }
  func.func @transform_18(%arg0: i32, %arg1: i32) -> (i32, i32) {
    %c0_i32 = arith.constant 0 : i32
    %c0_i32_0 = arith.constant 0 : i32
    %c0_i32_1 = arith.constant 0 : i32
    return %c0_i32, %c0_i32_0 : i32, i32
  }
  func.func @transform_19(%arg0: i32, %arg1: i32) -> (i32, i32, i32) {
    %c0_i32 = arith.constant 0 : i32
    %c0_i32_0 = arith.constant 0 : i32
    return %arg0, %arg1, %c0_i32 : i32, i32, i32
  }
}

</mosaic_0001>

<bundles_post_ra>
// kernel: ner_forward.3
= control target key start
LH: loop header
LB: loop body
LE: loop exit
PB: predicated region body
PF: predicated region fallthrough
CT: control target
= control target key end

     0   :  { %s333_s12 = smov 0   ;;  %s369_s0 = inlined_call_operand.vmem [shape: f32[32,32], index: 0, kind: input, shape index: {}]   ;;  %s370_s1 = inlined_call_operand.vmem [shape: f32[1,32], index: 1, kind: input, shape index: {}]   ;;  %s371_s2 = inlined_call_operand.vmem [shape: f32[1,32], index: 2, kind: input, shape index: {}]   ;;  %s372_s3 = inlined_call_operand.vmem [shape: f32[32,32], index: 3, kind: output, shape index: {}]  }
   0x1 LB: > { %s280_s13 = sadd.s32 4294967295, %s311_s12   ;;  %p284_p0 = scmp.ge.s32.totalorder %s311_s12, 1  ;;  %s311_s12 = sphi %s333_s12, %s13_s12  }
   0x2   : > { %p138_p1 = scmp.lt.s32.totalorder %s311_s12, 3 }
   0x4   : > { %p139_p2 = pnand %p284_p0, %p138_p1 }
   0x5   : > { %s285_s14 = sshll.u32 (!%p139_p2), %s280_s13, 1  ;;  %vm178_vm0 = vcmask (!%p139_p2), 261120   ;;  %v289_v21 = vld [vmem:[%s370_s1] ss:$0 sm:$0xff] (!%p139_p2) }
   0x6   : > { %142 = sbr.rel (%p139_p2) target bundleno = 335 (0x14f), region = 32  ;;  %p163_p3 = scmp.lt.s32.totalorder (!%p139_p2), %s285_s14, 3  ;;  %v290_v23 = vld [vmem:[%s371_s2] ss:$0 sm:$0xff] (!%p139_p2) }
   0xd   : > { %s374_s14 = smov (!%p163_p3, %s285_s14), 3 }
   0xe   : > { %s286_s15 = sshll.u32 %s374_s14, 3 }
   0xf   : > { %s166_s18 = scalar_lea.vmem %s369_s0, %s286_s15  ;;  %s172_s25 = scalar_lea.vmem %s372_s3, %s286_s15 }
  0x10   : > { %v174_v0 = vld [vmem:[%s166_s18] sm:$0xff]  ;;  %v175_v1 = vld [vmem:[%s166_s18 + $0x8] sm:$0xff] }
  0x11   : > { %v179_v2 = vsel %vm178_vm0, %v174_v0, 0.0  ;;  %v182_v3 = vsel %vm178_vm0, %v175_v1, 0.0 }
  0x12   : > { %180 = vadd.xlane.f32.xlu0 %v179_v2 }
  0x16   : > { %183 = vadd.xlane.f32.xlu0 %v182_v3 }
  0x9f   : > { %v181_v4 = vpop.xlane.xlu0 %180 }
  0xa0   : > { %v186_v5 = vmul.f32 0.03125, %v181_v4 }
  0xa2   : > { %v188_v6 = vsub.f32 %v174_v0, %v186_v5 }
  0xa3   : > { %v184_v7 = vpop.xlane.xlu0 %183 }
  0xa4   : > { %v187_v8 = vmul.f32 0.03125, %v184_v7  ;;  %v190_v9 = vmul.f32 %v188_v6, %v188_v6 }
  0xa6   : > { %v189_v10 = vsub.f32 %v175_v1, %v187_v8  ;;  %v192_v11 = vsel %vm178_vm0, %v190_v9, 0.0 }
  0xa7   : > { %193 = vadd.xlane.f32.xlu1 %v192_v11 }
  0xa8   : > { %v191_v12 = vmul.f32 %v189_v10, %v189_v10 }
  0xaa   : > { %v195_v13 = vsel %vm178_vm0, %v191_v12, 0.0 }
  0xab   : > { %196 = vadd.xlane.f32.xlu1 %v195_v13 }
 0x134   : > { %v194_v14 = vpop.xlane.xlu1 %193 }
 0x135   : > { %v198_v15 = vmul.f32 0.03125, %v194_v14 }
 0x137   : > { %v200_v16 = vadd.f32 1e-12, %v198_v15 }
 0x138   : > { %v197_v17 = vpop.xlane.xlu1 %196 }
 0x139   : > { %301 = vrsqrt.f32 %v200_v16  ;;  %v199_v18 = vmul.f32 0.03125, %v197_v17 }
 0x13b   : > { %v201_v19 = vadd.f32 1e-12, %v199_v18 }
 0x13d   : > { %303 = vrsqrt.f32 %v201_v19 }
 0x143   : > { %v302_v20 = vpop.eup %301 }
 0x144   : > { %v204_v22 = vmul.f32 %v302_v20, %v188_v6 }
 0x146   : > { %v212_v24 = vmul.f32 %v289_v21, %v204_v22 }
 0x147   : > { %v304_v25 = vpop.eup %303 }
 0x148   : > { %v220_v26 = vadd.f32 %v290_v23, %v212_v24  ;;  %v205_v27 = vmul.f32 %v304_v25, %v189_v10 }
 0x14a   : > { %222 = vst.msk [vmem:[%s172_s25] sm:$0xff] %vm178_vm0, %v220_v26  ;;  %v213_v28 = vmul.f32 %v289_v21, %v205_v27 }
 0x14c   : > { %v221_v29 = vadd.f32 %v290_v23, %v213_v28 }
 0x14e   : > { %223 = vst.msk [vmem:[%s172_s25 + $0x8] sm:$0xff] %vm178_vm0, %v221_v29 }
 0x14f PF: > { %s13_s12 = sadd.s32 1, %s311_s12  }
 0x150   : > { %p10_p4 = scmp.ge.s32.totalorder %s13_s12, 4  }
 0x152   :  { %12 = sbr.rel (!%p10_p4) target bundleno = 1 (0x1), region = 62 }

// kernel: ner_forward.4
= control target key start
LH: loop header
LB: loop body
LE: loop exit
PB: predicated region body
PF: predicated region fallthrough
CT: control target
= control target key end

     0   :  { %s1728_s24 = smov 0   ;;  %s1730_s25 = smov 0   ;;  %s1919_s0 = inlined_call_operand.vmem [shape: f32[2,16,32], index: 0, kind: input, shape index: {}, may-alias: {0,1}]   ;;  %s1920_s1 = inlined_call_operand.vmem [shape: f32[2,16,32], index: 1, kind: input, shape index: {}, may-alias: {0,1}]   ;;  %s1921_s2 = inlined_call_operand.vmem [shape: f32[2,1,16], index: 2, kind: input, shape index: {}]   ;;  %s1922_s3 = inlined_call_operand.vmem [shape: bf16[32,32], index: 3, kind: input, shape index: {}]   ;;  %s1923_s4 = inlined_call_operand.vmem [shape: f32[1,32], index: 4, kind: input, shape index: {}]   ;;  %s1924_s5 = inlined_call_operand.vmem [shape: bf16[32,64], index: 5, kind: input, shape index: {}]   ;;  %s1925_s6 = inlined_call_operand.vmem [shape: f32[1,64], index: 6, kind: input, shape index: {}]   ;;  %s1926_s7 = inlined_call_operand.vmem [shape: bf16[32,32], index: 7, kind: input, shape index: {}]   ;;  %s1927_s8 = inlined_call_operand.vmem [shape: f32[1,32], index: 8, kind: input, shape index: {}]   ;;  %s1928_s9 = inlined_call_operand.vmem [shape: f32[1,32], index: 9, kind: input, shape index: {}]   ;;  %s1929_s10 = inlined_call_operand.vmem [shape: f32[1,32], index: 10, kind: input, shape index: {}]   ;;  %s1930_s11 = inlined_call_operand.vmem [shape: bf16[32,64], index: 11, kind: input, shape index: {}]   ;;  %s1931_s12 = inlined_call_operand.vmem [shape: f32[1,64], index: 12, kind: input, shape index: {}]   ;;  %s1932_s13 = inlined_call_operand.vmem [shape: bf16[64,32], index: 13, kind: input, shape index: {}]   ;;  %s1933_s14 = inlined_call_operand.vmem [shape: f32[1,32], index: 14, kind: input, shape index: {}]   ;;  %s1934_s15 = inlined_call_operand.vmem [shape: f32[1,32], index: 15, kind: input, shape index: {}]   ;;  %s1935_s16 = inlined_call_operand.vmem [shape: f32[1,32], index: 16, kind: input, shape index: {}]   ;;  %s1936_s17 = inlined_call_operand.vmem [shape: f32[2,16,32], index: 17, kind: output, shape index: {}]  }
   0x1   :  { %1938 = sst [smem:[#allocation6_spill]] %s1919_s0  ;;  %s1732_s26 = smov 0  }
   0x2   :  { %1939 = sst [smem:[#allocation7_spill]] %s1920_s1  ;;  %s1734_s27 = smov 0  }
   0x3   :  { %1940 = sst [smem:[#allocation8_spill]] %s1922_s3  ;;  %s1736_s28 = smov 0  }
   0x4 LB: > { %1941 = sst [smem:[#allocation3_spill]] %s1626_s27  ;;  %s36_s29 = sadd.s32 1, %s1622_s26  ;;  %s1630_s28 = sphi %s1736_s28, %s27_s28   ;;  %s1626_s27 = sphi %s1734_s27, %s1949_s27   ;;  %s1622_s26 = sphi %s1732_s26, %s1951_s26   ;;  %s1618_s25 = sphi %s1730_s25, %s1947_s25   ;;  %s1614_s24 = sphi %s1728_s24, %s1950_s24  }
   0x5   : > { %s39_s0 = sadd.s32 1, %s1626_s27  ;;  %p37_p0 = scmp.ge.s32.totalorder %s36_s29, 2 }
   0x6   : > { %p1386_p1 = scmp.ge.s32.totalorder %s1630_s28, 1  ;;  %p524_p2 = scmp.lt.s32.totalorder %s1630_s28, 5 }
   0x7   : > { %s1953_s29 = smov (%p37_p0, %s36_s29), 0  ;;  %s1955_s0 = smov (!%p37_p0, %s39_s0), %s1626_s27 }
   0x8   : > { %1942 = sst [smem:[#allocation4_spill]] %s1953_s29  ;;  %p525_p3 = pnand %p1386_p1, %p524_p2 }
   0x9   : > { %p41_p4 = scmp.ge.s32.totalorder %s1955_s0, 2  ;;  %s1944_s3 = sld [smem:[#allocation8_spill]] (!%p525_p3)  ;;  %v1632_v1 = vmov (!%p525_p3), 0.0   ;;  %vm1633_vm0 = vmmov (!%p525_p3), 0   ;;  %v1568_v3 = vld [vmem:[%s1924_s5] sm:$0xff] (!%p525_p3)   ;;  %vm643_vm1 = vcmask (!%p525_p3), 261120  }
   0xa   : > { %528 = sbr.rel (%p525_p3) target bundleno = 2543 (0x9ef), region = 88  ;;  %1452 = vmatprep.subr.bf16.mxu1 (!%p525_p3), %v1632_v1  ;;  %1468 = vmatprep.subr.bf16.mxu0 (!%p525_p3), %v1632_v1  ;;  %p590_p5 = scmp.lt.s32.totalorder (!%p525_p3), %s1618_s25, 1  ;;  %v1569_v6 = vld [vmem:[%s1924_s5 + $0x8] sm:$0xff] (!%p525_p3)   ;;  %v1397_v14 = vld [vmem:[%s1925_s6] ss:$0 sm:$0xff] (!%p525_p3)  ;;  %vm763_vm2 = vcmask (!%p525_p3), 130048  }
   0xb   : > { %s1957_s0 = smov (%p41_p4, %s1955_s0), 0  ;;  %1456 = vmatprep.mubr.msk.bf16.mxu1 (!%p525_p3), %vm1633_vm0, %v1632_v1  ;;  %p592_p6 = scmp.lt.s32.totalorder (!%p525_p3), %s1614_s24, 1  ;;  %1470 = vmatprep.mubr.msk.bf16.mxu0 (!%p525_p3), %vm1633_vm0, %v1632_v1  ;;  %v1393_v17 = vld [vmem:[%s1923_s4] ss:$0 sm:$0xff] (!%p525_p3)  ;;  %vm983_vm3 = vcmask (!%p525_p3), 261248   ;;  %vm1200_vm4 = vcmask (!%p525_p3), 523264  }
   0xc   : > { %1943 = sst [smem:[#allocation5_spill]] %s1957_s0  ;;  %s1946_s29 = sld [smem:[#allocation7_spill]] (!%p525_p3) }
   0xf   : > { %v1566_v0 = vld [vmem:[%s1944_s3] sm:$0xff] (!%p525_p3)   ;;  %v1567_v2 = vld [vmem:[%s1944_s3 + $0x8] sm:$0xff] (!%p525_p3)   ;;  %s1945_s3 = sld [smem:[#allocation6_spill]] (!%p525_p3) }
  0x10   : > { %1453 = vmatpush3.bf16.msra.mxu1 (!%p525_p3), %v1566_v0 }
  0x11   : > { %1454 = vmatprep.subr.bf16.mxu1 %v1632_v1  ;;  %s1959_s25 = smov (!%p590_p5, %s1618_s25), 1  ;;  %s1961_s24 = smov (!%p592_p6, %s1614_s24), 1 }
  0x12   : > { %s1387_s20 = sshll.u32 %s1959_s25, 1  ;;  %s1426_s18 = sshll.u32 %s1959_s25, 4 }
  0x13   : > { %s1774_s21 = sadd.s32 %s1387_s20, %s1961_s24  ;;  %s602_s27 = scalar_lea.vmem %s1946_s29, %s1426_s18 }
  0x14   : > { %1455 = vmatpush3.bf16.msra.mxu1 %v1567_v2  ;;  %s1388_s22 = sshll.u32 %s1774_s21, 3  ;;  %v616_v7 = vld [vmem:[%s602_s27] sm:$0xff]  ;;  %v617_v8 = vld [vmem:[%s602_s27 + $0x8] sm:$0xff]  ;;  %s1634_s18 = smov 112  }
  0x15   : > { %1460 = vmatprep.subr.bf16.mxu1 %v1632_v1  ;;  %s597_s0 = scalar_lea.vmem %s1945_s3, %s1388_s22  ;;  %v687_v9 = vpack.c.bf16 %v617_v8, %v616_v7  ;;  %s605_s24 = scalar_lea.vmem %s1921_s2, %s1959_s25 }
  0x16   : > { %v1787_v4 = vld [vmem:[%s597_s0] sm:$0xff]  ;;  %s1635_s20 = smov 96   ;;  %s1636_s25 = smov 80  }
  0x17   : > { %v619_v5 = vpack.c.bf16 %v1787_v4, %v1787_v4  ;;  %v1401_v29 = vld [vmem:[%s605_s24] ss:$0 sm:$0xff]  ;;  %s1637_s27 = smov 16   ;;  %s613_s24 = scalar_lea.vmem %s1936_s17, %s1388_s22 }
  0x19   : > { %1457 = vmatmul.mubr.msk.bf16.vlgmr.msra.gmra.mrb[0].mxu1 %vm643_vm1, %v619_v5  ;;  %v1571_v5 = vld [vmem:[%s1926_s7 + $0x8] sm:$0xff]  }
  0x1a   : > { %1461 = vmatpush3.bf16.msra.mxu1 %v1568_v3  ;;  %1464 = vmatprep.mubr.msk.bf16.mxu1 %vm1633_vm0, %v1632_v1  ;;  %v1570_v3 = vld [vmem:[%s1926_s7] sm:$0xff]  }
  0x1b   : > { %1462 = vmatprep.subr.bf16.mxu1 %v1632_v1 }
  0x1e   : > { %1463 = vmatpush3.bf16.msra.mxu1 %v1569_v6 }
  0x1f   : > { %1474 = vmatprep.subr.bf16.mxu1 %v1632_v1 }
  0x21   : > { %1465 = vmatmul.mubr.msk.bf16.vlgmr.msra.gmra.mrb[4].mxu1 %vm643_vm1, %v687_v9 }
  0x22   : > { %1476 = vmatprep.mubr.msk.bf16.mxu1 %vm1633_vm0, %v1632_v1 }
  0xec   : > { %v681_v10 = vpop.f32.mrb[0].mxu1 }
  0xed   : > { %v1458_v11 = vpop.f32.mrb[1].mxu1  ;;  %v682_v22 = vadd.f32 %v1393_v17, %v681_v10 }
  0xee   : > { %v684_v12 = vpop.f32.mrb[2].mxu1 }
  0xef   : > { %v1459_v13 = vpop.f32.mrb[3].mxu1  ;;  %v755_v25 = vpack.c.bf16 %v682_v22, %v682_v22 }
  0xf0   : > { %v1406_v13 = vld [vmem:[%s1927_s8] ss:$0 sm:$0xff] }
  0xf4   : > { %v748_v15 = vpop.f32.mrb[4].mxu1 }
  0xf5   : > { %v1466_v16 = vpop.f32.mrb[5].mxu1  ;;  %v749_v19 = vadd.f32 %v1397_v14, %v748_v15 }
  0xf6   : > { %v751_v18 = vpop.f32.mrb[6].mxu1 }
  0xf7   : > { %v752_v20 = vadd.f32 %v1397_v14, %v751_v18  ;;  %v1467_v21 = vpop.f32.mrb[7].mxu1 }
  0xf9   : > { %v756_v23 = vpack.c.bf16 %v752_v20, %v749_v19 }
  0xfb   : > { %873 = vrot.lane.b32.xlu0 %v756_v23, %s1634_s18  ;;  %v768_v24 = vsel %vm763_vm2, %v756_v23, 0 }
  0xfc   : > { %1469 = vmatpush3.bf16.xpose.msra.mxu0 %v768_v24 }
  0xfd   : > { %1480 = vmatprep.subr.bf16.mxu0 %v1632_v1 }
  0xff   : > { %871 = vrot.lane.b32.xlu0 %v755_v25, %s1634_s18 }
 0x103   : > { %1471 = vmatmul.mubr.msk.bf16.vlgmr.msra.gmra.mrb[0].mxu0 %vm763_vm2, %v755_v25 }
 0x104   : > { %1482 = vmatprep.mubr.msk.bf16.mxu0 %vm1633_vm0, %v1632_v1 }
 0x16d   : > { %v874_v26 = vpop.permute.xlu0 %873 }
 0x16e   : > { %v879_v27 = vsel %vm763_vm2, %v874_v26, 0  ;;  %v1572_v26 = vld [vmem:[%s1930_s11] sm:$0xff]  }
 0x16f   : > { %1481 = vmatpush3.bf16.xpose.msra.mxu0 %v879_v27 }
 0x170   : > { %1492 = vmatprep.subr.bf16.mxu0 %v1632_v1 }
 0x171   : > { %v872_v28 = vpop.permute.xlu0 %871 }
 0x176   : > { %1483 = vmatmul.mubr.msk.bf16.vlgmr.msra.gmra.mrb[4].mxu0 %vm763_vm2, %v872_v28 }
 0x177   : > { %1496 = vmatprep.mubr.msk.bf16.mxu0 %vm1633_vm0, %v1632_v1  ;;  %1493 = vmatpush3.bf16.msra.mxu0 %v1570_v3 }
 0x178   : > { %1494 = vmatprep.subr.bf16.mxu0 %v1632_v1 }
 0x17b   : > { %1495 = vmatpush3.bf16.msra.mxu0 %v1571_v5 }
 0x17c   : > { %1508 = vmatprep.subr.bf16.mxu0 %v1632_v1 }
 0x1d6   : > { %v804_v30 = vpop.f32.mrb[0].mxu0 }
 0x1d7   : > { %v805_v31 = vadd.f32 %v1401_v29, %v804_v30  ;;  %v1472_v32 = vpop.f32.mrb[1].mxu0 }
 0x1d8   : > { %v807_v33 = vpop.f32.mrb[2].mxu0 }
 0x1d9   : > { %v1473_v34 = vpop.f32.mrb[3].mxu0  ;;  %v810_v35 = vsel %vm763_vm2, %v805_v31, -inf  ;;  %v1411_v33 = vld [vmem:[%s1929_s10] ss:$0 sm:$0xff] }
 0x1da   : > { %811 = vmax.xlane.f32.xlu1 %v810_v35 }
 0x249   : > { %v915_v36 = vpop.f32.mrb[4].mxu0 }
 0x24a   : > { %v916_v37 = vadd.f32 %v1401_v29, %v915_v36  ;;  %v1484_v38 = vpop.f32.mrb[5].mxu0 }
 0x24b   : > { %v918_v39 = vpop.f32.mrb[6].mxu0  ;;  %v1575_v38 = vld [vmem:[%s1932_s13 + $0x8] sm:$0xff]  }
 0x24c   : > { %v1485_v40 = vpop.f32.mrb[7].mxu0  ;;  %v921_v41 = vsel %vm763_vm2, %v916_v37, -inf  ;;  %v1576_v39 = vld [vmem:[%s1932_s13 + $0x10] sm:$0xff]  }
 0x24d   : > { %922 = vmax.xlane.f32.xlu1 %v921_v41  ;;  %v1577_v40 = vld [vmem:[%s1932_s13 + $0x18] sm:$0xff]   ;;  %v1412_v41 = vld [vmem:[%s1931_s12] ss:$0 sm:$0xff] }
 0x25e   : > { %823 = vrot.lane.b32.xlu1 %v756_v23, %s1635_s20 }
 0x267   : > { %v812_v42 = vpop.xlane.xlu1 %811 }
 0x268   : > { %v813_v43 = vsub.f32 %v805_v31, %v812_v42  ;;  %v1410_v31 = vld [vmem:[%s1928_s9] ss:$0 sm:$0xff] }
 0x26a   : > { %v814_v44 = vmul.f32 1.442695, %v813_v43 }
 0x26c   : > { %1578 = vpow2.f32 %v814_v44 }
 0x276   : > { %v1579_v45 = vpop.eup %1578 }
 0x277   : > { %v816_v46 = vsel %vm763_vm2, %v1579_v45, 0.0 }
 0x278   : > { %817 = vadd.xlane.f32.xlu0 %v816_v46 }
 0x2da   : > { %v923_v47 = vpop.xlane.xlu1 %922 }
 0x2db   : > { %v924_v48 = vsub.f32 %v916_v37, %v923_v47  ;;  %v1574_v37 = vld [vmem:[%s1932_s13] sm:$0xff]  }
 0x2dd   : > { %v925_v49 = vmul.f32 1.442695, %v924_v48 }
 0x2de   : > { %v824_v50 = vpop.permute.xlu1 %823 }
 0x2df   : > { %1580 = vpow2.f32 %v925_v49  ;;  %1475 = vmatpush3.bf16.msra.mxu1 %v824_v50 }
 0x2e0   : > { %1486 = vmatprep.subr.bf16.mxu1 %v1632_v1 }
 0x2e9   : > { %v1581_v51 = vpop.eup %1580 }
 0x2ea   : > { %v927_v52 = vsel %vm763_vm2, %v1581_v51, 0.0 }
 0x2eb   : > { %928 = vadd.xlane.f32.xlu1 %v927_v52 }
 0x2fc   : > { %933 = vrot.lane.b32.xlu1 %v756_v23, %s1636_s25 }
 0x305   : > { %v818_v53 = vpop.xlane.xlu0 %817 }
 0x306   : > { %1582 = vrcp.f32 %v818_v53 }
 0x310   : > { %v1583_v54 = vpop.eup %1582 }
 0x311   : > { %v820_v55 = vmul.f32 %v1583_v54, %v1579_v45 }
 0x313   : > { %v821_v56 = vpack.c.bf16 %v820_v55, %v820_v55 }
 0x315   : > { %1477 = vmatmul.mubr.msk.bf16.vlgmr.msra.gmra.mrb[8].mxu1 %vm763_vm2, %v821_v56  ;;  %v1416_v56 = vld [vmem:[%s1933_s14] ss:$0 sm:$0xff] }
 0x316   : > { %1488 = vmatprep.mubr.msk.bf16.mxu1 %vm1633_vm0, %v1632_v1 }
 0x378   : > { %v929_v57 = vpop.xlane.xlu1 %928 }
 0x379   : > { %1584 = vrcp.f32 %v929_v57 }
 0x37c   : > { %v934_v58 = vpop.permute.xlu1 %933 }
 0x37d   : > { %1487 = vmatpush3.bf16.msra.mxu1 %v934_v58 }
 0x37e   : > { %1500 = vmatprep.subr.bf16.mxu1 %v1632_v1 }
 0x383   : > { %v1585_v59 = vpop.eup %1584 }
 0x384   : > { %v931_v60 = vmul.f32 %v1585_v59, %v1581_v51 }
 0x386   : > { %v932_v61 = vpack.c.bf16 %v931_v60, %v931_v60 }
 0x388   : > { %1489 = vmatmul.mubr.msk.bf16.vlgmr.msra.gmra.mrb[12].mxu1 %vm763_vm2, %v932_v61 }
 0x389   : > { %1504 = vmatprep.mubr.msk.bf16.mxu1 %vm1633_vm0, %v1632_v1  ;;  %1501 = vmatpush3.bf16.msra.mxu1 %v1572_v26 }
 0x38a   : > { %1502 = vmatprep.subr.bf16.mxu1 %v1632_v1 }
 0x3e8   : > { %v863_v62 = vpop.f32.mrb[8].mxu1 }
 0x3e9   : > { %869 = vst.msk [vmem:[#allocation2] sm:$0xff] %vm763_vm2, %v863_v62  ;;  %v1478_v63 = vpop.f32.mrb[9].mxu1 }
 0x3ea   : > { %v866_v0 = vpop.f32.mrb[10].mxu1 }
 0x3eb   : > { %v1479_v2 = vpop.f32.mrb[11].mxu1 }
 0x45b   : > { %v973_v6 = vpop.f32.mrb[12].mxu1 }
 0x45c   : > { %980 = vrot.lane.b32.xlu1 %v973_v6, %s1637_s27  ;;  %v1490_v7 = vpop.f32.mrb[13].mxu1 }
 0x45d   : > { %v976_v8 = vpop.f32.mrb[14].mxu1 }
 0x45e   : > { %v1491_v9 = vpop.f32.mrb[15].mxu1 }
 0x4ce   : > { %v981_v10 = vpop.permute.xlu1 %980 }
 0x4cf   : > { %984 = vst.msk [vmem:[#allocation2] sm:$0xff] %vm983_vm3, %v981_v10 }
 0x4d6   : > { %v985_v11 = vld [vmem:[#allocation2] sm:$0xff] }
 0x4d7   : > { %v986_v12 = vpack.c.bf16 %v985_v11, %v985_v11  ;;  %v1422_v11 = vld [vmem:[%s1934_s15] ss:$0 sm:$0xff] }
 0x4d9   : > { %1497 = vmatmul.mubr.msk.bf16.vlgmr.msra.gmra.mrb[8].mxu0 %vm643_vm1, %v986_v12 }
 0x4da   : > { %1516 = vmatprep.mubr.msk.bf16.mxu0 %vm1633_vm0, %v1632_v1  ;;  %1509 = vmatpush3.bf16.msra.mxu0 %v1574_v37 }
 0x4db   : > { %1510 = vmatprep.subr.bf16.mxu0 %v1632_v1 }
 0x4de   : > { %1511 = vmatpush3.bf16.msra.mxu0 %v1575_v38 }
 0x4df   : > { %1512 = vmatprep.subr.bf16.mxu0 %v1632_v1 }
 0x4e2   : > { %1513 = vmatpush3.bf16.msra.mxu0 %v1576_v39 }
 0x4e3   : > { %1514 = vmatprep.subr.bf16.mxu0 %v1632_v1 }
 0x4e6   : > { %1515 = vmatpush3.bf16.msra.mxu0 %v1577_v40 }
 0x5ac   : > { %v1047_v14 = vpop.f32.mrb[8].mxu0 }
 0x5ad   : > { %v1048_v15 = vadd.f32 %v1406_v13, %v1047_v14  ;;  %v1498_v16 = vpop.f32.mrb[9].mxu0  ;;  %v1423_v13 = vld [vmem:[%s1935_s16] ss:$0 sm:$0xff] }
 0x5ae   : > { %v1050_v17 = vpop.f32.mrb[10].mxu0 }
 0x5af   : > { %v1499_v18 = vpop.f32.mrb[11].mxu0  ;;  %v1053_v19 = vadd.f32 %v1048_v15, %v1787_v4  ;;  %v1573_v4 = vld [vmem:[%s1930_s11 + $0x8] sm:$0xff]  }
 0x5b0   : > { %1503 = vmatpush3.bf16.msra.mxu1 %v1573_v4 }
 0x5b1   : > { %v1056_v20 = vsel %vm643_vm1, %v1053_v19, 0.0 }
 0x5b2   : > { %1057 = vadd.xlane.f32.xlu1 %v1056_v20 }
 0x63f   : > { %v1058_v21 = vpop.xlane.xlu1 %1057 }
 0x640   : > { %v1060_v22 = vmul.f32 0.03125, %v1058_v21 }
 0x642   : > { %v1061_v23 = vsub.f32 %v1053_v19, %v1060_v22 }
 0x644   : > { %v1062_v24 = vmul.f32 %v1061_v23, %v1061_v23 }
 0x646   : > { %v1063_v25 = vsel %vm643_vm1, %v1062_v24, 0.0 }
 0x647   : > { %1064 = vadd.xlane.f32.xlu0 %v1063_v25 }
 0x6d4   : > { %v1065_v27 = vpop.xlane.xlu0 %1064 }
 0x6d5   : > { %v1066_v28 = vmul.f32 0.03125, %v1065_v27 }
 0x6d7   : > { %v1067_v29 = vadd.f32 1e-12, %v1066_v28 }
 0x6d9   : > { %1586 = vrsqrt.f32 %v1067_v29 }
 0x6e3   : > { %v1587_v30 = vpop.eup %1586 }
 0x6e4   : > { %v1069_v32 = vmul.f32 %v1587_v30, %v1061_v23 }
 0x6e6   : > { %v1076_v34 = vmul.f32 %v1410_v31, %v1069_v32 }
 0x6e8   : > { %v1083_v35 = vadd.f32 %v1411_v33, %v1076_v34 }
 0x6ea   : > { %v1084_v36 = vpack.c.bf16 %v1083_v35, %v1083_v35 }
 0x6ec   : > { %1505 = vmatmul.mubr.msk.bf16.vlgmr.msra.gmra.mrb[16].mxu1 %vm643_vm1, %v1084_v36 }
 0x7bf   : > { %v1145_v42 = vpop.f32.mrb[16].mxu1 }
 0x7c0   : > { %v1146_v43 = vadd.f32 %v1412_v41, %v1145_v42  ;;  %v1506_v44 = vpop.f32.mrb[17].mxu1 }
 0x7c1   : > { %v1148_v45 = vpop.f32.mrb[18].mxu1 }
 0x7c2   : > { %v1152_v46 = vmul.f32 0.044715, %v1146_v43  ;;  %v1507_v47 = vpop.f32.mrb[19].mxu1  ;;  %v1151_v53 = vmul.f32 0.5, %v1146_v43 }
 0x7c4   : > { %v1153_v48 = vmul.f32 %v1152_v46, %v1146_v43 }
 0x7c6   : > { %v1154_v49 = vmul.f32 %v1153_v48, %v1146_v43 }
 0x7c8   : > { %v1155_v50 = vadd.f32 %v1154_v49, %v1146_v43 }
 0x7ca   : > { %v1156_v51 = vmul.f32 0.7978846, %v1155_v50 }
 0x7cc   : > { %1588 = vtanh.f32 %v1156_v51 }
 0x7d6   : > { %v1589_v52 = vpop.eup %1588 }
 0x7d7   : > { %v1158_v54 = vadd.f32 1.0, %v1589_v52 }
 0x7d9   : > { %v1159_v1 = vmul.f32 %v1158_v54, %v1151_v53 }
 0x7db   : > { %v1160_v55 = vpack.c.bf16 %v1159_v1, %v1159_v1 }
 0x7dd   : > { %1517 = vmatmul.mubr.msk.bf16.vlgmr.msra.gmra.mrb[12].mxu0 %vm1200_vm4, %v1160_v55 }
 0x8b0   : > { %v1238_v57 = vpop.f32.mrb[12].mxu0 }
 0x8b1   : > { %v1239_v58 = vadd.f32 %v1416_v56, %v1238_v57  ;;  %v1518_v59 = vpop.f32.mrb[13].mxu0 }
 0x8b2   : > { %v1241_v60 = vpop.f32.mrb[14].mxu0 }
 0x8b3   : > { %v1519_v61 = vpop.f32.mrb[15].mxu0  ;;  %v1244_v62 = vadd.f32 %v1239_v58, %v1083_v35 }
 0x8b5   : > { %v1247_v63 = vsel %vm643_vm1, %v1244_v62, 0.0 }
 0x8b6   : > { %1248 = vadd.xlane.f32.xlu0 %v1247_v63 }
 0x943   : > { %v1249_v0 = vpop.xlane.xlu0 %1248 }
 0x944   : > { %v1250_v2 = vmul.f32 0.03125, %v1249_v0 }
 0x946   : > { %v1251_v3 = vsub.f32 %v1244_v62, %v1250_v2 }
 0x948   : > { %v1252_v5 = vmul.f32 %v1251_v3, %v1251_v3 }
 0x94a   : > { %v1253_v6 = vsel %vm643_vm1, %v1252_v5, 0.0 }
 0x94b   : > { %1254 = vadd.xlane.f32.xlu0 %v1253_v6 }
 0x9d8   : > { %v1255_v7 = vpop.xlane.xlu0 %1254 }
 0x9d9   : > { %v1256_v8 = vmul.f32 0.03125, %v1255_v7 }
 0x9db   : > { %v1257_v9 = vadd.f32 1e-12, %v1256_v8 }
 0x9dd   : > { %1590 = vrsqrt.f32 %v1257_v9 }
 0x9e7   : > { %v1591_v10 = vpop.eup %1590 }
 0x9e8   : > { %v1259_v12 = vmul.f32 %v1591_v10, %v1251_v3 }
 0x9ea   : > { %v1266_v14 = vmul.f32 %v1422_v11, %v1259_v12 }
 0x9ec   : > { %v1273_v15 = vadd.f32 %v1423_v13, %v1266_v14 }
 0x9ee   : > { %1274 = vst.msk [vmem:[%s613_s24] sm:$0xff] %vm643_vm1, %v1273_v15 }
 0x9ef PF: > { %s27_s28 = sadd.s32 1, %s1630_s28   ;;  %s1947_s25 = sld [smem:[#allocation3_spill]] }
 0x9f0   : > { %p24_p7 = scmp.ge.s32.totalorder %s27_s28, 6   ;;  %s1948_s20 = sld [smem:[#allocation4_spill]] }
 0x9f1   : > { %s1949_s27 = sld [smem:[#allocation5_spill]]  ;;  %s1950_s24 = smov %s1622_s26 }
 0x9f2   :  { %26 = sbr.rel (!%p24_p7) target bundleno = 4 (0x4), region = 124 }
 0x9f6   : > { %s1951_s26 = smov %s1948_s20 }

// kernel: ner_forward.5
= control target key start
LH: loop header
LB: loop body
LE: loop exit
PB: predicated region body
PF: predicated region fallthrough
CT: control target
= control target key end

     0   :  { %s1878_s30 = smov 0   ;;  %s1880_s20 = smov 0   ;;  %s2084_s0 = inlined_call_operand.vmem [shape: f32[2,16,32], index: 0, kind: input, shape index: {}, may-alias: {0,1}]   ;;  %s2085_s1 = inlined_call_operand.vmem [shape: f32[2,16,32], index: 1, kind: input, shape index: {}, may-alias: {0,1}]   ;;  %s2086_s2 = inlined_call_operand.vmem [shape: f32[2,1,16], index: 2, kind: input, shape index: {}]   ;;  %s2087_s3 = inlined_call_operand.vmem [shape: bf16[32,32], index: 3, kind: input, shape index: {}]   ;;  %s2088_s4 = inlined_call_operand.vmem [shape: f32[1,32], index: 4, kind: input, shape index: {}]   ;;  %s2089_s5 = inlined_call_operand.vmem [shape: bf16[32,64], index: 5, kind: input, shape index: {}]   ;;  %s2090_s6 = inlined_call_operand.vmem [shape: f32[1,64], index: 6, kind: input, shape index: {}]   ;;  %s2091_s7 = inlined_call_operand.vmem [shape: bf16[32,32], index: 7, kind: input, shape index: {}]   ;;  %s2092_s8 = inlined_call_operand.vmem [shape: f32[1,32], index: 8, kind: input, shape index: {}]   ;;  %s2093_s9 = inlined_call_operand.vmem [shape: f32[1,32], index: 9, kind: input, shape index: {}]   ;;  %s2094_s10 = inlined_call_operand.vmem [shape: f32[1,32], index: 10, kind: input, shape index: {}]   ;;  %s2095_s11 = inlined_call_operand.vmem [shape: bf16[32,64], index: 11, kind: input, shape index: {}]   ;;  %s2096_s12 = inlined_call_operand.vmem [shape: f32[1,64], index: 12, kind: input, shape index: {}]   ;;  %s2097_s13 = inlined_call_operand.vmem [shape: bf16[64,32], index: 13, kind: input, shape index: {}]   ;;  %s2098_s14 = inlined_call_operand.vmem [shape: f32[1,32], index: 14, kind: input, shape index: {}]   ;;  %s2099_s15 = inlined_call_operand.vmem [shape: f32[1,32], index: 15, kind: input, shape index: {}]   ;;  %s2100_s16 = inlined_call_operand.vmem [shape: f32[1,32], index: 16, kind: input, shape index: {}]   ;;  %s2101_s17 = inlined_call_operand.vmem [shape: bf16[32,128], index: 17, kind: input, shape index: {}]   ;;  %s2102_s18 = inlined_call_operand.vmem [shape: f32[1,128], index: 18, kind: input, shape index: {}]   ;;  %s2103_s19 = inlined_call_operand.vmem [shape: f32[2,16,128], index: 19, kind: output, shape index: {}]  }
   0x1   :  { %2107 = sst [smem:[#allocation6_spill]] %s2084_s0  ;;  %s1876_s0 = smov 0  }
   0x2   :  { %2108 = sst [smem:[#allocation7_spill]] %s2085_s1  ;;  %s1882_s21 = smov 0  }
   0x3   :  { %2109 = sst [smem:[#allocation8_spill]] %s2086_s2  ;;  %s1884_s1 = smov 0  }
   0x4   :  { %2110 = sst [smem:[#allocation9_spill]] %s2087_s3 }
   0x5   :  { %2111 = sst [smem:[#allocation10_spill]] %s2089_s5 }
   0x6 LB: > { %2112 = sst [smem:[#allocation3_spill]] %s1764_s21  ;;  %s38_s22 = sadd.s32 1, %s1760_s20  ;;  %s1768_s1 = sphi %s1884_s1, %s29_s1   ;;  %s1764_s21 = sphi %s1882_s21, %s2122_s21   ;;  %s1760_s20 = sphi %s1880_s20, %s2124_s20   ;;  %s1756_s30 = sphi %s1878_s30, %s2120_s30   ;;  %s1752_s0 = sphi %s1876_s0, %s2123_s0  }
   0x7   : > { %s41_s2 = sadd.s32 1, %s1764_s21  ;;  %p39_p0 = scmp.ge.s32.totalorder %s38_s22, 2 }
   0x8   : > { %p1507_p1 = scmp.ge.s32.totalorder %s1768_s1, 1  ;;  %p574_p2 = scmp.lt.s32.totalorder %s1768_s1, 5 }
   0x9   : > { %s2126_s22 = smov (%p39_p0, %s38_s22), 0  ;;  %s2128_s2 = smov (!%p39_p0, %s41_s2), %s1764_s21 }
   0xa   : > { %2113 = sst [smem:[#allocation4_spill]] %s2126_s22  ;;  %p575_p3 = pnand %p1507_p1, %p574_p2 }
   0xb   : > { %p43_p4 = scmp.ge.s32.totalorder %s2128_s2, 2  ;;  %s2115_s5 = sld [smem:[#allocation10_spill]] (!%p575_p3)  ;;  %v1770_v1 = vmov (!%p575_p3), 0.0   ;;  %vm1771_vm0 = vmmov (!%p575_p3), 0   ;;  %vm697_vm1 = vcmask (!%p575_p3), 261120   ;;  %vm817_vm2 = vcmask (!%p575_p3), 130048  }
   0xc   : > { %578 = sbr.rel (%p575_p3) target bundleno = 2751 (0xabf), region = 96  ;;  %1588 = vmatprep.subr.bf16.mxu1 (!%p575_p3), %v1770_v1  ;;  %1580 = vmatprep.subr.bf16.mxu0 (!%p575_p3), %v1770_v1  ;;  %p644_p5 = scmp.lt.s32.totalorder (!%p575_p3), %s1756_s30, 1  ;;  %v1518_v10 = vld [vmem:[%s2090_s6] ss:$0 sm:$0xff] (!%p575_p3)  ;;  %vm1037_vm3 = vcmask (!%p575_p3), 261248   ;;  %vm1254_vm4 = vcmask (!%p575_p3), 523264  }
   0xd   : > { %s2130_s2 = smov (%p43_p4, %s2128_s2), 0  ;;  %1592 = vmatprep.mubr.msk.bf16.mxu1 (!%p575_p3), %vm1771_vm0, %v1770_v1  ;;  %s2116_s28 = sld [smem:[#allocation9_spill]] (!%p575_p3)  ;;  %1584 = vmatprep.mubr.msk.bf16.mxu0 (!%p575_p3), %vm1771_vm0, %v1770_v1  ;;  %v1514_v12 = vld [vmem:[%s2088_s4] ss:$0 sm:$0xff] (!%p575_p3) }
   0xe   : > { %2114 = sst [smem:[#allocation5_spill]] %s2130_s2  ;;  %p646_p6 = scmp.lt.s32.totalorder (!%p575_p3), %s1752_s0, 1 }
   0xf   : > { %s2117_s27 = sld [smem:[#allocation7_spill]] (!%p575_p3)  ;;  %s2118_s22 = sld [smem:[#allocation6_spill]] (!%p575_p3) }
  0x10   : > { %s2119_s3 = sld [smem:[#allocation8_spill]] (!%p575_p3) }
  0x11   : > { %v1702_v0 = vld [vmem:[%s2115_s5] sm:$0xff] (!%p575_p3)   ;;  %v1703_v2 = vld [vmem:[%s2115_s5 + $0x8] sm:$0xff] (!%p575_p3)  }
  0x12   : > { %1589 = vmatpush3.bf16.msra.mxu1 (!%p575_p3), %v1702_v0 }
  0x13   : > { %1590 = vmatprep.subr.bf16.mxu1 %v1770_v1  ;;  %v1704_v3 = vld [vmem:[%s2116_s28] sm:$0xff]   ;;  %s2132_s30 = smov (!%p644_p5, %s1756_s30), 1  ;;  %v1705_v4 = vld [vmem:[%s2116_s28 + $0x8] sm:$0xff]   ;;  %s2134_s0 = smov (!%p646_p6, %s1752_s0), 1 }
  0x14   : > { %1581 = vmatpush3.bf16.msra.mxu0 %v1704_v3  ;;  %s1551_s24 = sshll.u32 %s2132_s30, 4  ;;  %s1508_s25 = sshll.u32 %s2132_s30, 1  ;;  %v1706_v3 = vld [vmem:[%s2091_s7] sm:$0xff]  }
  0x15   : > { %1582 = vmatprep.subr.bf16.mxu0 %v1770_v1  ;;  %s656_s5 = scalar_lea.vmem %s2117_s27, %s1551_s24  ;;  %s1937_s2 = sadd.s32 %s1508_s25, %s2134_s0 }
  0x16   : > { %1591 = vmatpush3.bf16.msra.mxu1 %v1703_v2  ;;  %v670_v5 = vld [vmem:[%s656_s5] sm:$0xff]  ;;  %v671_v6 = vld [vmem:[%s656_s5 + $0x8] sm:$0xff]  ;;  %s1509_s29 = sshll.u32 %s1937_s2, 3  ;;  %s1772_s28 = smov 112  }
  0x17   : > { %1602 = vmatprep.subr.bf16.mxu1 %v1770_v1  ;;  %v741_v7 = vpack.c.bf16 %v671_v6, %v670_v5  ;;  %s651_s21 = scalar_lea.vmem %s2118_s22, %s1509_s29  ;;  %s659_s26 = scalar_lea.vmem %s2119_s3, %s2132_s30 }
  0x18   : > { %1583 = vmatpush3.bf16.msra.mxu0 %v1705_v4  ;;  %v1946_v8 = vld [vmem:[%s651_s21] sm:$0xff]  ;;  %s1773_s27 = smov 96   ;;  %s1774_s30 = smov 80   ;;  %v1707_v4 = vld [vmem:[%s2091_s7 + $0x8] sm:$0xff]  }
  0x19   : > { %1596 = vmatprep.subr.bf16.mxu0 %v1770_v1  ;;  %1593 = vmatmul.mubr.msk.bf16.vlgmr.msra.gmra.mrb[0].mxu1 %vm697_vm1, %v741_v7  ;;  %v673_v9 = vpack.c.bf16 %v1946_v8, %v1946_v8  ;;  %v1522_v29 = vld [vmem:[%s659_s26] ss:$0 sm:$0xff]  ;;  %s1775_s22 = smov 16   ;;  %s667_s21 = scalar_lea.vmem %s2103_s19, %s1509_s29 }
  0x1a   : > { %1604 = vmatprep.mubr.msk.bf16.mxu1 %vm1771_vm0, %v1770_v1 }
  0x1b   : > { %1585 = vmatmul.mubr.msk.bf16.vlgmr.msra.gmra.mrb[0].mxu0 %vm697_vm1, %v673_v9 }
  0x1c   : > { %1598 = vmatprep.mubr.msk.bf16.mxu0 %vm1771_vm0, %v1770_v1 }
  0xec   : > { %v802_v11 = vpop.f32.mrb[0].mxu1 }
  0xed   : > { %v1594_v13 = vpop.f32.mrb[1].mxu1  ;;  %v803_v16 = vadd.f32 %v1518_v10, %v802_v11 }
  0xee   : > { %v805_v14 = vpop.f32.mrb[2].mxu1  ;;  %v735_v15 = vpop.f32.mrb[0].mxu0  ;;  %v1527_v13 = vld [vmem:[%s2092_s8] ss:$0 sm:$0xff] }
  0xef   : > { %v806_v17 = vadd.f32 %v1518_v10, %v805_v14  ;;  %v1595_v18 = vpop.f32.mrb[3].mxu1  ;;  %v736_v19 = vadd.f32 %v1514_v12, %v735_v15  ;;  %v1586_v20 = vpop.f32.mrb[1].mxu0 }
  0xf0   : > { %v738_v21 = vpop.f32.mrb[2].mxu0 }
  0xf1   : > { %v810_v22 = vpack.c.bf16 %v806_v17, %v803_v16  ;;  %v1587_v23 = vpop.f32.mrb[3].mxu0  ;;  %v809_v24 = vpack.c.bf16 %v736_v19, %v736_v19 }
  0xf3   : > { %927 = vrot.lane.b32.xlu0 %v810_v22, %s1772_s28  ;;  %v822_v25 = vsel %vm817_vm2, %v810_v22, 0 }
  0xf4   : > { %1597 = vmatpush3.bf16.xpose.msra.mxu0 %v822_v25 }
  0xf5   : > { %1608 = vmatprep.subr.bf16.mxu0 %v1770_v1 }
  0xf7   : > { %925 = vrot.lane.b32.xlu0 %v809_v24, %s1772_s28 }
  0xfb   : > { %1599 = vmatmul.mubr.msk.bf16.vlgmr.msra.gmra.mrb[4].mxu0 %vm817_vm2, %v809_v24 }
  0xfc   : > { %1610 = vmatprep.mubr.msk.bf16.mxu0 %vm1771_vm0, %v1770_v1 }
 0x165   : > { %v928_v26 = vpop.permute.xlu0 %927 }
 0x166   : > { %v933_v27 = vsel %vm817_vm2, %v928_v26, 0  ;;  %v1708_v26 = vld [vmem:[%s2095_s11] sm:$0xff]  }
 0x167   : > { %1609 = vmatpush3.bf16.xpose.msra.mxu0 %v933_v27 }
 0x168   : > { %1620 = vmatprep.subr.bf16.mxu0 %v1770_v1 }
 0x169   : > { %v926_v28 = vpop.permute.xlu0 %925 }
 0x16e   : > { %1611 = vmatmul.mubr.msk.bf16.vlgmr.msra.gmra.mrb[8].mxu0 %vm817_vm2, %v926_v28 }
 0x16f   : > { %1624 = vmatprep.mubr.msk.bf16.mxu0 %vm1771_vm0, %v1770_v1  ;;  %1621 = vmatpush3.bf16.msra.mxu0 %v1706_v3 }
 0x170   : > { %1622 = vmatprep.subr.bf16.mxu0 %v1770_v1 }
 0x173   : > { %1623 = vmatpush3.bf16.msra.mxu0 %v1707_v4 }
 0x174   : > { %1636 = vmatprep.subr.bf16.mxu0 %v1770_v1 }
 0x1ce   : > { %v858_v30 = vpop.f32.mrb[4].mxu0 }
 0x1cf   : > { %v859_v31 = vadd.f32 %v1522_v29, %v858_v30  ;;  %v1600_v32 = vpop.f32.mrb[5].mxu0 }
 0x1d0   : > { %v861_v33 = vpop.f32.mrb[6].mxu0 }
 0x1d1   : > { %v1601_v34 = vpop.f32.mrb[7].mxu0  ;;  %v864_v35 = vsel %vm817_vm2, %v859_v31, -inf  ;;  %v1532_v33 = vld [vmem:[%s2094_s10] ss:$0 sm:$0xff] }
 0x1d2   : > { %865 = vmax.xlane.f32.xlu1 %v864_v35 }
 0x241   : > { %v969_v36 = vpop.f32.mrb[8].mxu0 }
 0x242   : > { %v970_v37 = vadd.f32 %v1522_v29, %v969_v36  ;;  %v1612_v38 = vpop.f32.mrb[9].mxu0 }
 0x243   : > { %v972_v39 = vpop.f32.mrb[10].mxu0  ;;  %v1711_v38 = vld [vmem:[%s2097_s13 + $0x8] sm:$0xff]  }
 0x244   : > { %v1613_v40 = vpop.f32.mrb[11].mxu0  ;;  %v975_v41 = vsel %vm817_vm2, %v970_v37, -inf  ;;  %v1712_v39 = vld [vmem:[%s2097_s13 + $0x10] sm:$0xff]  }
 0x245   : > { %976 = vmax.xlane.f32.xlu1 %v975_v41  ;;  %v1713_v40 = vld [vmem:[%s2097_s13 + $0x18] sm:$0xff]   ;;  %v1533_v41 = vld [vmem:[%s2096_s12] ss:$0 sm:$0xff] }
 0x256   : > { %877 = vrot.lane.b32.xlu1 %v810_v22, %s1773_s27 }
 0x25f   : > { %v866_v42 = vpop.xlane.xlu1 %865 }
 0x260   : > { %v867_v43 = vsub.f32 %v859_v31, %v866_v42  ;;  %v1531_v31 = vld [vmem:[%s2093_s9] ss:$0 sm:$0xff] }
 0x262   : > { %v868_v44 = vmul.f32 1.442695, %v867_v43 }
 0x264   : > { %1716 = vpow2.f32 %v868_v44 }
 0x26e   : > { %v1717_v45 = vpop.eup %1716 }
 0x26f   : > { %v870_v46 = vsel %vm817_vm2, %v1717_v45, 0.0 }
 0x270   : > { %871 = vadd.xlane.f32.xlu0 %v870_v46 }
 0x2d2   : > { %v977_v47 = vpop.xlane.xlu1 %976 }
 0x2d3   : > { %v978_v48 = vsub.f32 %v970_v37, %v977_v47  ;;  %v1710_v37 = vld [vmem:[%s2097_s13] sm:$0xff]  }
 0x2d5   : > { %v979_v49 = vmul.f32 1.442695, %v978_v48 }
 0x2d6   : > { %v878_v50 = vpop.permute.xlu1 %877 }
 0x2d7   : > { %1718 = vpow2.f32 %v979_v49  ;;  %1603 = vmatpush3.bf16.msra.mxu1 %v878_v50 }
 0x2d8   : > { %1614 = vmatprep.subr.bf16.mxu1 %v1770_v1 }
 0x2e1   : > { %v1719_v51 = vpop.eup %1718 }
 0x2e2   : > { %v981_v52 = vsel %vm817_vm2, %v1719_v51, 0.0 }
 0x2e3   : > { %982 = vadd.xlane.f32.xlu1 %v981_v52 }
 0x2f4   : > { %987 = vrot.lane.b32.xlu1 %v810_v22, %s1774_s30 }
 0x2fd   : > { %v872_v53 = vpop.xlane.xlu0 %871 }
 0x2fe   : > { %1720 = vrcp.f32 %v872_v53 }
 0x308   : > { %v1721_v54 = vpop.eup %1720 }
 0x309   : > { %v874_v55 = vmul.f32 %v1721_v54, %v1717_v45 }
 0x30b   : > { %v875_v56 = vpack.c.bf16 %v874_v55, %v874_v55 }
 0x30d   : > { %1605 = vmatmul.mubr.msk.bf16.vlgmr.msra.gmra.mrb[4].mxu1 %vm817_vm2, %v875_v56 }
 0x30e   : > { %1616 = vmatprep.mubr.msk.bf16.mxu1 %vm1771_vm0, %v1770_v1 }
 0x370   : > { %v983_v57 = vpop.xlane.xlu1 %982 }
 0x371   : > { %1722 = vrcp.f32 %v983_v57  ;;  %v1537_v57 = vld [vmem:[%s2098_s14] ss:$0 sm:$0xff] }
 0x374   : > { %v988_v58 = vpop.permute.xlu1 %987 }
 0x375   : > { %1615 = vmatpush3.bf16.msra.mxu1 %v988_v58 }
 0x376   : > { %1628 = vmatprep.subr.bf16.mxu1 %v1770_v1 }
 0x37b   : > { %v1723_v59 = vpop.eup %1722 }
 0x37c   : > { %v985_v60 = vmul.f32 %v1723_v59, %v1719_v51 }
 0x37e   : > { %v986_v61 = vpack.c.bf16 %v985_v60, %v985_v60 }
 0x380   : > { %1617 = vmatmul.mubr.msk.bf16.vlgmr.msra.gmra.mrb[8].mxu1 %vm817_vm2, %v986_v61 }
 0x381   : > { %1632 = vmatprep.mubr.msk.bf16.mxu1 %vm1771_vm0, %v1770_v1  ;;  %1629 = vmatpush3.bf16.msra.mxu1 %v1708_v26 }
 0x382   : > { %1630 = vmatprep.subr.bf16.mxu1 %v1770_v1 }
 0x3e0   : > { %v917_v62 = vpop.f32.mrb[4].mxu1 }
 0x3e1   : > { %923 = vst.msk [vmem:[#allocation2] sm:$0xff] %vm817_vm2, %v917_v62  ;;  %v1606_v63 = vpop.f32.mrb[5].mxu1 }
 0x3e2   : > { %v920_v0 = vpop.f32.mrb[6].mxu1 }
 0x3e3   : > { %v1607_v2 = vpop.f32.mrb[7].mxu1 }
 0x453   : > { %v1027_v5 = vpop.f32.mrb[8].mxu1 }
 0x454   : > { %1034 = vrot.lane.b32.xlu1 %v1027_v5, %s1775_s22  ;;  %v1618_v6 = vpop.f32.mrb[9].mxu1 }
 0x455   : > { %v1030_v7 = vpop.f32.mrb[10].mxu1 }
 0x456   : > { %v1619_v9 = vpop.f32.mrb[11].mxu1  ;;  %v1714_v7 = vld [vmem:[%s2101_s17] sm:$0xff]  }
 0x457   : > { %v1715_v9 = vld [vmem:[%s2101_s17 + $0x8] sm:$0xff]  }
 0x4c6   : > { %v1035_v10 = vpop.permute.xlu1 %1034 }
 0x4c7   : > { %1038 = vst.msk [vmem:[#allocation2] sm:$0xff] %vm1037_vm3, %v1035_v10 }
 0x4ce   : > { %v1039_v11 = vld [vmem:[#allocation2] sm:$0xff] }
 0x4cf   : > { %v1040_v12 = vpack.c.bf16 %v1039_v11, %v1039_v11 }
 0x4d1   : > { %1625 = vmatmul.mubr.msk.bf16.vlgmr.msra.gmra.mrb[12].mxu0 %vm697_vm1, %v1040_v12 }
 0x4d2   : > { %1644 = vmatprep.mubr.msk.bf16.mxu0 %vm1771_vm0, %v1770_v1  ;;  %1637 = vmatpush3.bf16.msra.mxu0 %v1710_v37 }
 0x4d3   : > { %1638 = vmatprep.subr.bf16.mxu0 %v1770_v1 }
 0x4d6   : > { %1639 = vmatpush3.bf16.msra.mxu0 %v1711_v38 }
 0x4d7   : > { %1640 = vmatprep.subr.bf16.mxu0 %v1770_v1 }
 0x4da   : > { %1641 = vmatpush3.bf16.msra.mxu0 %v1712_v39 }
 0x4db   : > { %1642 = vmatprep.subr.bf16.mxu0 %v1770_v1 }
 0x4de   : > { %1643 = vmatpush3.bf16.msra.mxu0 %v1713_v40 }
 0x5a4   : > { %v1101_v14 = vpop.f32.mrb[12].mxu0 }
 0x5a5   : > { %v1102_v15 = vadd.f32 %v1527_v13, %v1101_v14  ;;  %v1626_v16 = vpop.f32.mrb[13].mxu0  ;;  %v1543_v14 = vld [vmem:[%s2099_s15] ss:$0 sm:$0xff] }
 0x5a6   : > { %v1104_v17 = vpop.f32.mrb[14].mxu0 }
 0x5a7   : > { %v1627_v18 = vpop.f32.mrb[15].mxu0  ;;  %v1107_v19 = vadd.f32 %v1102_v15, %v1946_v8  ;;  %v1709_v8 = vld [vmem:[%s2095_s11 + $0x8] sm:$0xff]  }
 0x5a8   : > { %1631 = vmatpush3.bf16.msra.mxu1 %v1709_v8 }
 0x5a9   : > { %v1110_v20 = vsel %vm697_vm1, %v1107_v19, 0.0  ;;  %1648 = vmatprep.subr.bf16.mxu1 %v1770_v1 }
 0x5aa   : > { %1111 = vadd.xlane.f32.xlu1 %v1110_v20 }
 0x637   : > { %v1112_v21 = vpop.xlane.xlu1 %1111 }
 0x638   : > { %v1114_v22 = vmul.f32 0.03125, %v1112_v21 }
 0x63a   : > { %v1115_v23 = vsub.f32 %v1107_v19, %v1114_v22  ;;  %v1545_v19 = vld [vmem:[%s2102_s18] ss:$0 sm:$0xff] }
 0x63c   : > { %v1116_v24 = vmul.f32 %v1115_v23, %v1115_v23 }
 0x63e   : > { %v1117_v25 = vsel %vm697_vm1, %v1116_v24, 0.0 }
 0x63f   : > { %1118 = vadd.xlane.f32.xlu0 %v1117_v25 }
 0x6cc   : > { %v1119_v27 = vpop.xlane.xlu0 %1118 }
 0x6cd   : > { %v1120_v28 = vmul.f32 0.03125, %v1119_v27 }
 0x6cf   : > { %v1121_v29 = vadd.f32 1e-12, %v1120_v28 }
 0x6d1   : > { %1724 = vrsqrt.f32 %v1121_v29 }
 0x6db   : > { %v1725_v30 = vpop.eup %1724 }
 0x6dc   : > { %v1123_v32 = vmul.f32 %v1725_v30, %v1115_v23 }
 0x6de   : > { %v1130_v34 = vmul.f32 %v1531_v31, %v1123_v32 }
 0x6e0   : > { %v1137_v35 = vadd.f32 %v1532_v33, %v1130_v34 }
 0x6e2   : > { %v1138_v36 = vpack.c.bf16 %v1137_v35, %v1137_v35 }
 0x6e4   : > { %1633 = vmatmul.mubr.msk.bf16.vlgmr.msra.gmra.mrb[12].mxu1 %vm697_vm1, %v1138_v36 }
 0x6e5   : > { %1652 = vmatprep.mubr.msk.bf16.mxu1 %vm1771_vm0, %v1770_v1  ;;  %1649 = vmatpush3.bf16.msra.mxu1 %v1714_v7 }
 0x6e6   : > { %1650 = vmatprep.subr.bf16.mxu1 %v1770_v1  ;;  %v1544_v1 = vld [vmem:[%s2100_s16] ss:$0 sm:$0xff] }
 0x6e9   : > { %1651 = vmatpush3.bf16.msra.mxu1 %v1715_v9 }
 0x7b7   : > { %v1199_v42 = vpop.f32.mrb[12].mxu1 }
 0x7b8   : > { %v1200_v43 = vadd.f32 %v1533_v41, %v1199_v42  ;;  %v1634_v44 = vpop.f32.mrb[13].mxu1 }
 0x7b9   : > { %v1202_v45 = vpop.f32.mrb[14].mxu1 }
 0x7ba   : > { %v1206_v46 = vmul.f32 0.044715, %v1200_v43  ;;  %v1635_v47 = vpop.f32.mrb[15].mxu1  ;;  %v1205_v53 = vmul.f32 0.5, %v1200_v43 }
 0x7bc   : > { %v1207_v48 = vmul.f32 %v1206_v46, %v1200_v43 }
 0x7be   : > { %v1208_v49 = vmul.f32 %v1207_v48, %v1200_v43 }
 0x7c0   : > { %v1209_v50 = vadd.f32 %v1208_v49, %v1200_v43 }
 0x7c2   : > { %v1210_v51 = vmul.f32 0.7978846, %v1209_v50 }
 0x7c4   : > { %1726 = vtanh.f32 %v1210_v51 }
 0x7ce   : > { %v1727_v52 = vpop.eup %1726 }
 0x7cf   : > { %v1212_v54 = vadd.f32 1.0, %v1727_v52 }
 0x7d1   : > { %v1213_v55 = vmul.f32 %v1212_v54, %v1205_v53 }
 0x7d3   : > { %v1214_v56 = vpack.c.bf16 %v1213_v55, %v1213_v55 }
 0x7d5   : > { %1645 = vmatmul.mubr.msk.bf16.vlgmr.msra.gmra.mrb[16].mxu0 %vm1254_vm4, %v1214_v56 }
 0x8a8   : > { %v1292_v58 = vpop.f32.mrb[16].mxu0 }
 0x8a9   : > { %v1293_v59 = vadd.f32 %v1537_v57, %v1292_v58  ;;  %v1646_v60 = vpop.f32.mrb[17].mxu0 }
 0x8aa   : > { %v1295_v61 = vpop.f32.mrb[18].mxu0 }
 0x8ab   : > { %v1647_v62 = vpop.f32.mrb[19].mxu0  ;;  %v1298_v63 = vadd.f32 %v1293_v59, %v1137_v35 }
 0x8ad   : > { %v1301_v0 = vsel %vm697_vm1, %v1298_v63, 0.0 }
 0x8ae   : > { %1302 = vadd.xlane.f32.xlu0 %v1301_v0 }
 0x93b   : > { %v1303_v2 = vpop.xlane.xlu0 %1302 }
 0x93c   : > { %v1304_v3 = vmul.f32 0.03125, %v1303_v2 }
 0x93e   : > { %v1305_v4 = vsub.f32 %v1298_v63, %v1304_v3 }
 0x940   : > { %v1306_v5 = vmul.f32 %v1305_v4, %v1305_v4 }
 0x942   : > { %v1307_v6 = vsel %vm697_vm1, %v1306_v5, 0.0 }
 0x943   : > { %1308 = vadd.xlane.f32.xlu0 %v1307_v6 }
 0x9d0   : > { %v1309_v10 = vpop.xlane.xlu0 %1308 }
 0x9d1   : > { %v1310_v11 = vmul.f32 0.03125, %v1309_v10 }
 0x9d3   : > { %v1311_v12 = vadd.f32 1e-12, %v1310_v11 }
 0x9d5   : > { %1728 = vrsqrt.f32 %v1311_v12 }
 0x9df   : > { %v1729_v13 = vpop.eup %1728 }
 0x9e0   : > { %v1313_v15 = vmul.f32 %v1729_v13, %v1305_v4 }
 0x9e2   : > { %v1320_v16 = vmul.f32 %v1543_v14, %v1313_v15 }
 0x9e4   : > { %v1327_v17 = vadd.f32 %v1544_v1, %v1320_v16 }
 0x9e6   : > { %v1328_v18 = vpack.c.bf16 %v1327_v17, %v1327_v17 }
 0x9e8   : > { %1653 = vmatmul.mubr.msk.bf16.vlgmr.msra.gmra.mrb[16].mxu1 %vm697_vm1, %v1328_v18 }
 0xabb   : > { %v1389_v20 = vpop.f32.mrb[16].mxu1 }
 0xabc   : > { %v1390_v21 = vadd.f32 %v1545_v19, %v1389_v20  ;;  %v1654_v22 = vpop.f32.mrb[17].mxu1 }
 0xabd   : > { %v1392_v23 = vpop.f32.mrb[18].mxu1 }
 0xabe   : > { %1395 = vst [vmem:[%s667_s21] sm:$0xff] %v1390_v21  ;;  %v1655_v24 = vpop.f32.mrb[19].mxu1 }
 0xabf PF: > { %s29_s1 = sadd.s32 1, %s1768_s1   ;;  %s2120_s30 = sld [smem:[#allocation3_spill]] }
 0xac0   : > { %p26_p7 = scmp.ge.s32.totalorder %s29_s1, 6   ;;  %s2121_s22 = sld [smem:[#allocation4_spill]] }
 0xac1   : > { %s2122_s21 = sld [smem:[#allocation5_spill]]  ;;  %s2123_s0 = smov %s1760_s20 }
 0xac2   :  { %28 = sbr.rel (!%p26_p7) target bundleno = 6 (0x6), region = 132 }
 0xac6   : > { %s2124_s20 = smov %s2121_s22 }

</bundles_post_ra>
